<compile_context>
chip_gen: v6e
topology: v6e:2x2x1
jax: 0.10.0
libtpu: 0.0.40
codegen_flags: <defaults>
</compile_context>

<pallas_src>
import functools

import jax
import jax.numpy as jnp
from jax.experimental import pallas as pl
from jax.experimental.pallas import tpu as pltpu

LATENT = 2
D_IN = 784
D_OUT_PAD = 896    # 7 * 128 -> lane-dense recon output
HEAD_PAD = 128     # fused mu/logVar head width (lanes 0:2 = mu, 2:4 = logVar)


def _round_up(n, m):
    return (n + m - 1) // m * m


# ---------------------------------------------------------------------------
# Kernel
# ---------------------------------------------------------------------------
def vae_kernel(
    x_ref, eps_ref,
    w1_ref, b1_ref, w2_ref, b2_ref,
    wmulv_ref, bmulv_ref,
    wd1_ref, bd1_ref, wd2_ref, bd2_ref, wd3_ref, bd3_ref,
    out_ref, mulv_ref,
):
    f32 = jnp.float32
    bf16 = jnp.bfloat16

    x = x_ref[...]                                    # (TB, 784) bf16

    # ----- encoder -----
    h1 = jnp.maximum(
        jnp.dot(x, w1_ref[...], preferred_element_type=f32) + b1_ref[...], 0.0)
    h2 = jnp.maximum(
        jnp.dot(h1.astype(bf16), w2_ref[...], preferred_element_type=f32)
        + b2_ref[...], 0.0)

    # fused mu / logVar head: lanes 0:2 = mu, lanes 2:4 = logVar, rest zero.
    mulv = (jnp.dot(h2.astype(bf16), wmulv_ref[...], preferred_element_type=f32)
            + bmulv_ref[...])                         # (TB, 128) f32

    # ----- reparameterize: z = mu + exp(logVar / 2) * eps -----
    eps = eps_ref[...]                                # (TB, 2) f32
    z0 = mulv[:, 0:1] + jnp.exp(mulv[:, 2:3] * 0.5) * eps[:, 0:1]
    z1 = mulv[:, 1:2] + jnp.exp(mulv[:, 3:4] * 0.5) * eps[:, 1:2]

    # ----- decoder -----
    # First layer (2 -> 64) as a 2-term outer product on the VPU: avoids a
    # 128-deep MXU contraction where 126 of the rows would be zeros.
    d1 = jnp.maximum(
        z0 * wd1_ref[0:1, :] + z1 * wd1_ref[1:2, :] + bd1_ref[...], 0.0)

    d2 = jnp.maximum(
        jnp.dot(d1.astype(bf16), wd2_ref[...], preferred_element_type=f32)
        + bd2_ref[...], 0.0)
    logits = (jnp.dot(d2.astype(bf16), wd3_ref[...], preferred_element_type=f32)
              + bd3_ref[...])                         # (TB, 896) f32

    out_ref[...] = jax.nn.sigmoid(logits)             # lane-dense (TB, 896)
    mulv_ref[...] = mulv                              # lane-dense (TB, 128)


# ---------------------------------------------------------------------------
# One-time parameter packing (outside the jitted forward)
# ---------------------------------------------------------------------------
def prepack_params(params, matmul_dtype=jnp.bfloat16):
    """Fuse mu/logVar heads, pad decFC3 to 896 lanes, pad decFC1 to 8 sublanes,
    cast MXU weights to bf16. Run once; reuse the result for every forward."""
    (w1, b1, w2, b2, wmu, bmu, wlv, blv, wd1, bd1, wd2, bd2, wd3, bd3) = params

    wmulv = (jnp.zeros((64, HEAD_PAD), jnp.float32)
             .at[:, 0:LATENT].set(wmu)
             .at[:, LATENT:2 * LATENT].set(wlv))
    bmulv = (jnp.zeros((1, HEAD_PAD), jnp.float32)
             .at[:, 0:LATENT].set(bmu)
             .at[:, LATENT:2 * LATENT].set(blv))
    wd1_p = jnp.zeros((8, 64), jnp.float32).at[0:LATENT, :].set(wd1)
    wd3_p = jnp.zeros((256, D_OUT_PAD), jnp.float32).at[:, :D_IN].set(wd3)
    bd3_p = jnp.zeros((1, D_OUT_PAD), jnp.float32).at[:, :D_IN].set(bd3)

    return (
        w1.astype(matmul_dtype), b1,
        w2.astype(matmul_dtype), b2,
        wmulv.astype(matmul_dtype), bmulv,
        wd1_p, bd1,                                  # VPU path stays f32
        wd2.astype(matmul_dtype), bd2,
        wd3_p.astype(matmul_dtype), bd3_p,
    )


# ---------------------------------------------------------------------------
# Forward
# ---------------------------------------------------------------------------
@functools.partial(jax.jit, static_argnames=("tile_b",))
def vae_forward(x, eps, packed, *, tile_b=256):
    """x: (B, 784) f32, eps: (B, 2) f32 (the torch.randn_like draw)."""
    (w1, b1, w2, b2, wmulv, bmulv, wd1, bd1, wd2, bd2, wd3, bd3) = packed

    B = x.shape[0]
    TB = min(tile_b, _round_up(B, 16))   # 16-row alignment for bf16 sublanes
    Bp = _round_up(B, TB)
    if Bp != B:
        x = jnp.pad(x, ((0, Bp - B), (0, 0)))
        eps = jnp.pad(eps, ((0, Bp - B), (0, 0)))
    xb = x.astype(jnp.bfloat16)          # halve activation HBM traffic

    grid = (Bp // TB,)

    def batch_spec(width):
        return pl.BlockSpec((TB, width), lambda i: (i, 0))

    def resident(arr):                   # weights: same block for every step
        return pl.BlockSpec(arr.shape, lambda i: (0, 0))

    recon_p, mulv = pl.pallas_call(
        vae_kernel,
        grid=grid,
        out_shape=(
            jax.ShapeDtypeStruct((Bp, D_OUT_PAD), jnp.float32),
            jax.ShapeDtypeStruct((Bp, HEAD_PAD), jnp.float32),
        ),
        in_specs=[
            batch_spec(D_IN), batch_spec(LATENT),
            resident(w1), resident(b1), resident(w2), resident(b2),
            resident(wmulv), resident(bmulv),
            resident(wd1), resident(bd1), resident(wd2), resident(bd2),
            resident(wd3), resident(bd3),
        ],
        out_specs=(batch_spec(D_OUT_PAD), batch_spec(HEAD_PAD)),
        compiler_params=pltpu.CompilerParams(
            dimension_semantics=("parallel",)),
    )(xb, eps, w1, b1, w2, b2, wmulv, bmulv, wd1, bd1, wd2, bd2, wd3, bd3)

    recon = recon_p[:B, :D_IN]
    mu = mulv[:B, 0:LATENT]
    logvar = mulv[:B, LATENT:2 * LATENT]
    return recon, mu, logvar


# ---------------------------------------------------------------------------
# Init & reference
# ---------------------------------------------------------------------------
def init_params(key):
    """Deterministic init mimicking nn.Linear default (uniform +-1/sqrt(fan_in)).
    Weights stored transposed as (in, out) so the kernel computes y = x@W + b."""
    dims = [(784, 256), (256, 64), (64, LATENT), (64, LATENT),
            (LATENT, 64), (64, 256), (256, 784)]
    params = []
    for i, (fin, fout) in enumerate(dims):
        kw, kb = jax.random.split(jax.random.fold_in(key, i))
        bound = 1.0 / (fin ** 0.5)
        w = jax.random.uniform(kw, (fin, fout), jnp.float32, -bound, bound)
        b = jax.random.uniform(kb, (1, fout), jnp.float32, -bound, bound)
        params += [w, b]
    return tuple(params)


def vae_reference(x, eps, params, matmul_dtype=jnp.bfloat16):
    """Pure-JAX reference mirroring the kernel's bf16-in / f32-accum matmuls."""
    def mm(a, w):
        return jnp.dot(a.astype(matmul_dtype), w.astype(matmul_dtype),
                       preferred_element_type=jnp.float32)
    (w1, b1, w2, b2, wmu, bmu, wlv, blv, wd1, bd1, wd2, bd2, wd3, bd3) = params
    h1 = jnp.maximum(mm(x, w1) + b1, 0.0)
    h2 = jnp.maximum(mm(h1, w2) + b2, 0.0)
    mu = mm(h2, wmu) + bmu
    lv = mm(h2, wlv) + blv
    z = mu + jnp.exp(lv * 0.5) * eps
    d1 = jnp.maximum(z @ wd1 + bd1, 0.0)
    d2 = jnp.maximum(mm(d1, wd2) + bd2, 0.0)
    recon = jax.nn.sigmoid(mm(d2, wd3) + bd3)
    return recon, mu, lv


if __name__ == "__main__":
    key = jax.random.PRNGKey(0)
    k_x, k_eps, k_p = jax.random.split(key, 3)

    # Small shapes: a flattened-MNIST-like batch of 8 plus the explicit
    # reparameterization noise (torch.randn_like draw passed as an input).
    B = 8
    x = jax.random.uniform(k_x, (B, 784), jnp.float32)
    eps = jax.random.normal(k_eps, (B, LATENT), jnp.float32)
    params = init_params(k_p)
    packed = prepack_params(params)                  # packed / padded / bf16, once

    recon, mu, lv = vae_forward(x, eps, packed, tile_b=128)
    jax.block_until_ready((recon, mu, lv))

    r_ref, mu_ref, lv_ref = vae_reference(x, eps, params)
    assert recon.shape == (B, 784) and mu.shape == (B, LATENT) and lv.shape == (B, LATENT)
    assert jnp.allclose(recon, r_ref, atol=1e-2, rtol=1e-2)
    assert jnp.allclose(mu, mu_ref, atol=1e-2, rtol=1e-2)
    assert jnp.allclose(lv, lv_ref, atol=1e-2, rtol=1e-2)

    # Multi-tile batch: exercises the batch grid (2 steps of 16 rows).
    B2 = 32
    x2 = jax.random.uniform(jax.random.fold_in(k_x, 1), (B2, 784), jnp.float32)
    eps2 = jax.random.normal(jax.random.fold_in(k_eps, 1), (B2, LATENT), jnp.float32)
    r2, mu2, lv2 = vae_forward(x2, eps2, packed, tile_b=16)
    jax.block_until_ready((r2, mu2, lv2))
    r2_ref, mu2_ref, lv2_ref = vae_reference(x2, eps2, params)
    assert r2.shape == (B2, 784) and mu2.shape == (B2, LATENT)
    assert jnp.allclose(r2, r2_ref, atol=1e-2, rtol=1e-2)
    assert jnp.allclose(mu2, mu2_ref, atol=1e-2, rtol=1e-2)
    assert jnp.allclose(lv2, lv2_ref, atol=1e-2, rtol=1e-2)

    print("KERNEL_OK")
</pallas_src>

<mosaic_0001>
module attributes {stable_mosaic.version = 11 : i64} {
  func.func @vae_kernel(%arg0: i32, %arg1: memref<16x784xbf16, #tpu.memory_space<vmem>>, %arg2: memref<16x2xf32, #tpu.memory_space<vmem>>, %arg3: memref<784x256xbf16, #tpu.memory_space<vmem>>, %arg4: memref<1x256xf32, #tpu.memory_space<vmem>>, %arg5: memref<256x64xbf16, #tpu.memory_space<vmem>>, %arg6: memref<1x64xf32, #tpu.memory_space<vmem>>, %arg7: memref<64x128xbf16, #tpu.memory_space<vmem>>, %arg8: memref<1x128xf32, #tpu.memory_space<vmem>>, %arg9: memref<8x64xf32, #tpu.memory_space<vmem>>, %arg10: memref<1x64xf32, #tpu.memory_space<vmem>>, %arg11: memref<64x256xbf16, #tpu.memory_space<vmem>>, %arg12: memref<1x256xf32, #tpu.memory_space<vmem>>, %arg13: memref<256x896xbf16, #tpu.memory_space<vmem>>, %arg14: memref<1x896xf32, #tpu.memory_space<vmem>>, %arg15: memref<16x896xf32, #tpu.memory_space<vmem>>, %arg16: memref<16x128xf32, #tpu.memory_space<vmem>>) attributes {dimension_semantics = [#tpu.dimension_semantics<parallel>], iteration_bounds = array<i64: 1>, scalar_prefetch = 0 : i64, scratch_operands = 0 : i64, tpu.core_type = #tpu.core_type<tc>, window_params = [{transform_indices = @transform_0, window_bounds = array<i64: 16, 784>}, {transform_indices = @transform_1, window_bounds = array<i64: 16, 2>}, {pipeline_mode = #tpu.pipeline_mode<synchronous>, transform_indices = @transform_2, window_bounds = array<i64: 784, 256>}, {pipeline_mode = #tpu.pipeline_mode<synchronous>, transform_indices = @transform_3, window_bounds = array<i64: 1, 256>}, {pipeline_mode = #tpu.pipeline_mode<synchronous>, transform_indices = @transform_4, window_bounds = array<i64: 256, 64>}, {pipeline_mode = #tpu.pipeline_mode<synchronous>, transform_indices = @transform_5, window_bounds = array<i64: 1, 64>}, {pipeline_mode = #tpu.pipeline_mode<synchronous>, transform_indices = @transform_6, window_bounds = array<i64: 64, 128>}, {pipeline_mode = #tpu.pipeline_mode<synchronous>, transform_indices = @transform_7, window_bounds = array<i64: 1, 128>}, {pipeline_mode = #tpu.pipeline_mode<synchronous>, transform_indices = @transform_8, window_bounds = array<i64: 8, 64>}, {pipeline_mode = #tpu.pipeline_mode<synchronous>, transform_indices = @transform_9, window_bounds = array<i64: 1, 64>}, {pipeline_mode = #tpu.pipeline_mode<synchronous>, transform_indices = @transform_10, window_bounds = array<i64: 64, 256>}, {pipeline_mode = #tpu.pipeline_mode<synchronous>, transform_indices = @transform_11, window_bounds = array<i64: 1, 256>}, {pipeline_mode = #tpu.pipeline_mode<synchronous>, transform_indices = @transform_12, window_bounds = array<i64: 256, 896>}, {pipeline_mode = #tpu.pipeline_mode<synchronous>, transform_indices = @transform_13, window_bounds = array<i64: 1, 896>}, {transform_indices = @transform_14, window_bounds = array<i64: 16, 896>}, {transform_indices = @transform_15, window_bounds = array<i64: 16, 128>}]} {
    %c0 = arith.constant 0 : index
    %c0_0 = arith.constant 0 : index
    %0 = vector.load %arg1[%c0, %c0_0] : memref<16x784xbf16, #tpu.memory_space<vmem>>, vector<16x784xbf16>
    %c0_1 = arith.constant 0 : index
    %c0_2 = arith.constant 0 : index
    %1 = vector.load %arg3[%c0_1, %c0_2] : memref<784x256xbf16, #tpu.memory_space<vmem>>, vector<784x256xbf16>
    %cst = arith.constant dense<0.000000e+00> : vector<16x256xf32>
    %2 = tpu.matmul %0, %1, %cst {dimension_numbers = #tpu.dot_dimension_numbers<[1], [0], [0], [1], [0, 0, 1, 1], [], []>} : vector<16x784xbf16>, vector<784x256xbf16>, vector<16x256xf32> -> vector<16x256xf32>
    %c0_3 = arith.constant 0 : index
    %c0_4 = arith.constant 0 : index
    %3 = vector.load %arg4[%c0_3, %c0_4] : memref<1x256xf32, #tpu.memory_space<vmem>>, vector<1x256xf32>
    %4 = vector.broadcast %3 : vector<1x256xf32> to vector<16x256xf32>
    %5 = arith.addf %2, %4 : vector<16x256xf32>
    %cst_5 = arith.constant 0.000000e+00 : f32
    %6 = vector.broadcast %cst_5 : f32 to vector<16x256xf32>
    %7 = arith.maximumf %5, %6 : vector<16x256xf32>
    %8 = arith.truncf %7 : vector<16x256xf32> to vector<16x256xbf16>
    %c0_6 = arith.constant 0 : index
    %c0_7 = arith.constant 0 : index
    %9 = vector.load %arg5[%c0_6, %c0_7] : memref<256x64xbf16, #tpu.memory_space<vmem>>, vector<256x64xbf16>
    %cst_8 = arith.constant dense<0.000000e+00> : vector<16x64xf32>
    %10 = tpu.matmul %8, %9, %cst_8 {dimension_numbers = #tpu.dot_dimension_numbers<[1], [0], [0], [1], [0, 0, 1, 1], [], []>} : vector<16x256xbf16>, vector<256x64xbf16>, vector<16x64xf32> -> vector<16x64xf32>
    %c0_9 = arith.constant 0 : index
    %c0_10 = arith.constant 0 : index
    %11 = vector.load %arg6[%c0_9, %c0_10] : memref<1x64xf32, #tpu.memory_space<vmem>>, vector<1x64xf32>
    %12 = vector.broadcast %11 : vector<1x64xf32> to vector<16x64xf32>
    %13 = arith.addf %10, %12 : vector<16x64xf32>
    %cst_11 = arith.constant 0.000000e+00 : f32
    %14 = vector.broadcast %cst_11 : f32 to vector<16x64xf32>
    %15 = arith.maximumf %13, %14 : vector<16x64xf32>
    %16 = arith.truncf %15 : vector<16x64xf32> to vector<16x64xbf16>
    %c0_12 = arith.constant 0 : index
    %c0_13 = arith.constant 0 : index
    %17 = vector.load %arg7[%c0_12, %c0_13] : memref<64x128xbf16, #tpu.memory_space<vmem>>, vector<64x128xbf16>
    %cst_14 = arith.constant dense<0.000000e+00> : vector<16x128xf32>
    %18 = tpu.matmul %16, %17, %cst_14 {dimension_numbers = #tpu.dot_dimension_numbers<[1], [0], [0], [1], [0, 0, 1, 1], [], []>} : vector<16x64xbf16>, vector<64x128xbf16>, vector<16x128xf32> -> vector<16x128xf32>
    %c0_15 = arith.constant 0 : index
    %c0_16 = arith.constant 0 : index
    %19 = vector.load %arg8[%c0_15, %c0_16] : memref<1x128xf32, #tpu.memory_space<vmem>>, vector<1x128xf32>
    %20 = vector.broadcast %19 : vector<1x128xf32> to vector<16x128xf32>
    %21 = arith.addf %18, %20 : vector<16x128xf32>
    %c0_17 = arith.constant 0 : index
    %c0_18 = arith.constant 0 : index
    %22 = vector.load %arg2[%c0_17, %c0_18] : memref<16x2xf32, #tpu.memory_space<vmem>>, vector<16x2xf32>
    %23 = vector.extract_strided_slice %21 {offsets = [0, 0], sizes = [16, 1], strides = [1, 1]} : vector<16x128xf32> to vector<16x1xf32>
    %24 = vector.extract_strided_slice %21 {offsets = [0, 2], sizes = [16, 1], strides = [1, 1]} : vector<16x128xf32> to vector<16x1xf32>
    %cst_19 = arith.constant 5.000000e-01 : f32
    %25 = vector.broadcast %cst_19 : f32 to vector<16x1xf32>
    %26 = arith.mulf %24, %25 : vector<16x1xf32>
    %27 = math.exp %26 : vector<16x1xf32>
    %28 = vector.extract_strided_slice %22 {offsets = [0, 0], sizes = [16, 1], strides = [1, 1]} : vector<16x2xf32> to vector<16x1xf32>
    %29 = arith.mulf %27, %28 : vector<16x1xf32>
    %30 = arith.addf %23, %29 : vector<16x1xf32>
    %31 = vector.extract_strided_slice %21 {offsets = [0, 1], sizes = [16, 1], strides = [1, 1]} : vector<16x128xf32> to vector<16x1xf32>
    %32 = vector.extract_strided_slice %21 {offsets = [0, 3], sizes = [16, 1], strides = [1, 1]} : vector<16x128xf32> to vector<16x1xf32>
    %cst_20 = arith.constant 5.000000e-01 : f32
    %33 = vector.broadcast %cst_20 : f32 to vector<16x1xf32>
    %34 = arith.mulf %32, %33 : vector<16x1xf32>
    %35 = math.exp %34 : vector<16x1xf32>
    %36 = vector.extract_strided_slice %22 {offsets = [0, 1], sizes = [16, 1], strides = [1, 1]} : vector<16x2xf32> to vector<16x1xf32>
    %37 = arith.mulf %35, %36 : vector<16x1xf32>
    %38 = arith.addf %31, %37 : vector<16x1xf32>
    %c0_21 = arith.constant 0 : index
    %c0_22 = arith.constant 0 : index
    %39 = vector.load %arg9[%c0_21, %c0_22] : memref<8x64xf32, #tpu.memory_space<vmem>>, vector<1x64xf32>
    %40 = vector.broadcast %30 : vector<16x1xf32> to vector<16x64xf32>
    %41 = vector.broadcast %39 : vector<1x64xf32> to vector<16x64xf32>
    %42 = arith.mulf %40, %41 : vector<16x64xf32>
    %c1 = arith.constant 1 : index
    %c0_23 = arith.constant 0 : index
    %43 = vector.load %arg9[%c1, %c0_23] : memref<8x64xf32, #tpu.memory_space<vmem>>, vector<1x64xf32>
    %44 = vector.broadcast %38 : vector<16x1xf32> to vector<16x64xf32>
    %45 = vector.broadcast %43 : vector<1x64xf32> to vector<16x64xf32>
    %46 = arith.mulf %44, %45 : vector<16x64xf32>
    %47 = arith.addf %42, %46 : vector<16x64xf32>
    %c0_24 = arith.constant 0 : index
    %c0_25 = arith.constant 0 : index
    %48 = vector.load %arg10[%c0_24, %c0_25] : memref<1x64xf32, #tpu.memory_space<vmem>>, vector<1x64xf32>
    %49 = vector.broadcast %48 : vector<1x64xf32> to vector<16x64xf32>
    %50 = arith.addf %47, %49 : vector<16x64xf32>
    %cst_26 = arith.constant 0.000000e+00 : f32
    %51 = vector.broadcast %cst_26 : f32 to vector<16x64xf32>
    %52 = arith.maximumf %50, %51 : vector<16x64xf32>
    %53 = arith.truncf %52 : vector<16x64xf32> to vector<16x64xbf16>
    %c0_27 = arith.constant 0 : index
    %c0_28 = arith.constant 0 : index
    %54 = vector.load %arg11[%c0_27, %c0_28] : memref<64x256xbf16, #tpu.memory_space<vmem>>, vector<64x256xbf16>
    %cst_29 = arith.constant dense<0.000000e+00> : vector<16x256xf32>
    %55 = tpu.matmul %53, %54, %cst_29 {dimension_numbers = #tpu.dot_dimension_numbers<[1], [0], [0], [1], [0, 0, 1, 1], [], []>} : vector<16x64xbf16>, vector<64x256xbf16>, vector<16x256xf32> -> vector<16x256xf32>
    %c0_30 = arith.constant 0 : index
    %c0_31 = arith.constant 0 : index
    %56 = vector.load %arg12[%c0_30, %c0_31] : memref<1x256xf32, #tpu.memory_space<vmem>>, vector<1x256xf32>
    %57 = vector.broadcast %56 : vector<1x256xf32> to vector<16x256xf32>
    %58 = arith.addf %55, %57 : vector<16x256xf32>
    %cst_32 = arith.constant 0.000000e+00 : f32
    %59 = vector.broadcast %cst_32 : f32 to vector<16x256xf32>
    %60 = arith.maximumf %58, %59 : vector<16x256xf32>
    %61 = arith.truncf %60 : vector<16x256xf32> to vector<16x256xbf16>
    %c0_33 = arith.constant 0 : index
    %c0_34 = arith.constant 0 : index
    %62 = vector.load %arg13[%c0_33, %c0_34] : memref<256x896xbf16, #tpu.memory_space<vmem>>, vector<256x896xbf16>
    %cst_35 = arith.constant dense<0.000000e+00> : vector<16x896xf32>
    %63 = tpu.matmul %61, %62, %cst_35 {dimension_numbers = #tpu.dot_dimension_numbers<[1], [0], [0], [1], [0, 0, 1, 1], [], []>} : vector<16x256xbf16>, vector<256x896xbf16>, vector<16x896xf32> -> vector<16x896xf32>
    %c0_36 = arith.constant 0 : index
    %c0_37 = arith.constant 0 : index
    %64 = vector.load %arg14[%c0_36, %c0_37] : memref<1x896xf32, #tpu.memory_space<vmem>>, vector<1x896xf32>
    %65 = vector.broadcast %64 : vector<1x896xf32> to vector<16x896xf32>
    %66 = arith.addf %63, %65 : vector<16x896xf32>
    %67 = arith.negf %66 : vector<16x896xf32>
    %68 = math.exp %67 : vector<16x896xf32>
    %cst_38 = arith.constant 1.000000e+00 : f32
    %69 = vector.broadcast %cst_38 : f32 to vector<16x896xf32>
    %70 = arith.addf %69, %68 : vector<16x896xf32>
    %71 = arith.divf %69, %70 : vector<16x896xf32>
    %c0_39 = arith.constant 0 : index
    %c0_40 = arith.constant 0 : index
    %72 = vector.load %arg15[%c0_39, %c0_40] : memref<16x896xf32, #tpu.memory_space<vmem>>, vector<16x896xf32>
    tpu.vector_store %arg15[%c0_39, %c0_40], %71 {strides = array<i32>} : memref<16x896xf32, #tpu.memory_space<vmem>>, vector<16x896xf32>,
    %c0_41 = arith.constant 0 : index
    %c0_42 = arith.constant 0 : index
    %73 = vector.load %arg16[%c0_41, %c0_42] : memref<16x128xf32, #tpu.memory_space<vmem>>, vector<16x128xf32>
    tpu.vector_store %arg16[%c0_41, %c0_42], %21 {strides = array<i32>} : memref<16x128xf32, #tpu.memory_space<vmem>>, vector<16x128xf32>,
    return
  }
  func.func @transform_0(%arg0: i32) -> (i32, i32) {
    %c0_i32 = arith.constant 0 : i32
    %c0_i32_0 = arith.constant 0 : i32
    return %arg0, %c0_i32 : i32, i32
  }
  func.func @transform_1(%arg0: i32) -> (i32, i32) {
    %c0_i32 = arith.constant 0 : i32
    %c0_i32_0 = arith.constant 0 : i32
    return %arg0, %c0_i32 : i32, i32
  }
  func.func @transform_2(%arg0: i32) -> (i32, i32) {
    %c0_i32 = arith.constant 0 : i32
    %c0_i32_0 = arith.constant 0 : i32
    %c0_i32_1 = arith.constant 0 : i32
    return %c0_i32, %c0_i32_0 : i32, i32
  }
  func.func @transform_3(%arg0: i32) -> (i32, i32) {
    %c0_i32 = arith.constant 0 : i32
    %c0_i32_0 = arith.constant 0 : i32
    %c0_i32_1 = arith.constant 0 : i32
    return %c0_i32, %c0_i32_0 : i32, i32
  }
  func.func @transform_4(%arg0: i32) -> (i32, i32) {
    %c0_i32 = arith.constant 0 : i32
    %c0_i32_0 = arith.constant 0 : i32
    %c0_i32_1 = arith.constant 0 : i32
    return %c0_i32, %c0_i32_0 : i32, i32
  }
  func.func @transform_5(%arg0: i32) -> (i32, i32) {
    %c0_i32 = arith.constant 0 : i32
    %c0_i32_0 = arith.constant 0 : i32
    %c0_i32_1 = arith.constant 0 : i32
    return %c0_i32, %c0_i32_0 : i32, i32
  }
  func.func @transform_6(%arg0: i32) -> (i32, i32) {
    %c0_i32 = arith.constant 0 : i32
    %c0_i32_0 = arith.constant 0 : i32
    %c0_i32_1 = arith.constant 0 : i32
    return %c0_i32, %c0_i32_0 : i32, i32
  }
  func.func @transform_7(%arg0: i32) -> (i32, i32) {
    %c0_i32 = arith.constant 0 : i32
    %c0_i32_0 = arith.constant 0 : i32
    %c0_i32_1 = arith.constant 0 : i32
    return %c0_i32, %c0_i32_0 : i32, i32
  }
  func.func @transform_8(%arg0: i32) -> (i32, i32) {
    %c0_i32 = arith.constant 0 : i32
    %c0_i32_0 = arith.constant 0 : i32
    %c0_i32_1 = arith.constant 0 : i32
    return %c0_i32, %c0_i32_0 : i32, i32
  }
  func.func @transform_9(%arg0: i32) -> (i32, i32) {
    %c0_i32 = arith.constant 0 : i32
    %c0_i32_0 = arith.constant 0 : i32
    %c0_i32_1 = arith.constant 0 : i32
    return %c0_i32, %c0_i32_0 : i32, i32
  }
  func.func @transform_10(%arg0: i32) -> (i32, i32) {
    %c0_i32 = arith.constant 0 : i32
    %c0_i32_0 = arith.constant 0 : i32
    %c0_i32_1 = arith.constant 0 : i32
    return %c0_i32, %c0_i32_0 : i32, i32
  }
  func.func @transform_11(%arg0: i32) -> (i32, i32) {
    %c0_i32 = arith.constant 0 : i32
    %c0_i32_0 = arith.constant 0 : i32
    %c0_i32_1 = arith.constant 0 : i32
    return %c0_i32, %c0_i32_0 : i32, i32
  }
  func.func @transform_12(%arg0: i32) -> (i32, i32) {
    %c0_i32 = arith.constant 0 : i32
    %c0_i32_0 = arith.constant 0 : i32
    %c0_i32_1 = arith.constant 0 : i32
    return %c0_i32, %c0_i32_0 : i32, i32
  }
  func.func @transform_13(%arg0: i32) -> (i32, i32) {
    %c0_i32 = arith.constant 0 : i32
    %c0_i32_0 = arith.constant 0 : i32
    %c0_i32_1 = arith.constant 0 : i32
    return %c0_i32, %c0_i32_0 : i32, i32
  }
  func.func @transform_14(%arg0: i32) -> (i32, i32) {
    %c0_i32 = arith.constant 0 : i32
    %c0_i32_0 = arith.constant 0 : i32
    return %arg0, %c0_i32 : i32, i32
  }
  func.func @transform_15(%arg0: i32) -> (i32, i32) {
    %c0_i32 = arith.constant 0 : i32
    %c0_i32_0 = arith.constant 0 : i32
    return %arg0, %c0_i32 : i32, i32
  }
}

</mosaic_0001>

<bundles_post_ra>
// kernel: vae_forward.1
= control target key start
LH: loop header
LB: loop body
LE: loop exit
PB: predicated region body
PF: predicated region fallthrough
CT: control target
= control target key end

     0   :  { %21 = vsyncpa [#allocation3], 0  ;;  %s3491_s0 = inlined_call_operand.vmem [shape: bf16[16,784], index: 0, kind: input, shape index: {}]   ;;  %s3492_s1 = inlined_call_operand.vmem [shape: f32[16,2], index: 1, kind: input, shape index: {}]   ;;  %s3493_s2 = inlined_call_operand.hbm [shape: bf16[784,256], index: 2, kind: input, shape index: {}]   ;;  %s3494_s3 = inlined_call_operand.vmem [shape: f32[1,256], index: 3, kind: input, shape index: {}]   ;;  %s3495_s4 = inlined_call_operand.vmem [shape: bf16[256,64], index: 4, kind: input, shape index: {}]   ;;  %s3496_s5 = inlined_call_operand.vmem [shape: f32[1,64], index: 5, kind: input, shape index: {}]   ;;  %s3497_s6 = inlined_call_operand.vmem [shape: bf16[64,128], index: 6, kind: input, shape index: {}]   ;;  %s3498_s7 = inlined_call_operand.vmem [shape: f32[1,128], index: 7, kind: input, shape index: {}]   ;;  %s3499_s8 = inlined_call_operand.vmem [shape: f32[8,64], index: 8, kind: input, shape index: {}]   ;;  %s3500_s9 = inlined_call_operand.vmem [shape: f32[1,64], index: 9, kind: input, shape index: {}]   ;;  %s3501_s10 = inlined_call_operand.vmem [shape: bf16[64,256], index: 10, kind: input, shape index: {}]   ;;  %s3502_s11 = inlined_call_operand.vmem [shape: f32[1,256], index: 11, kind: input, shape index: {}]   ;;  %s3503_s12 = inlined_call_operand.hbm [shape: bf16[256,896], index: 12, kind: input, shape index: {}]   ;;  %s3504_s13 = inlined_call_operand.vmem [shape: f32[1,896], index: 13, kind: input, shape index: {}]   ;;  %s3505_s14 = inlined_call_operand.vmem [shape: f32[16,896], index: 14, kind: output, shape index: {0}]   ;;  %s3506_s15 = inlined_call_operand.vmem [shape: f32[16,128], index: 15, kind: output, shape index: {1}]  }
   0x1   :  { %22 = vsyncpa [#allocation5], 0  ;;  %s3170_s18 = smov [#allocation2]  }
   0x2   :  { %s32_s19 = sshll.u32 %s3170_s18, 4  ;;  %s33_s19 = int_to_ptr.vmem [resolvable:$true] %s32_s19 }
   0x3   :  { %s3134_s20 = scalar_lea.vmem %s33_s19, 12544  ;;  %p3139_p1 = scmp.lt.s32.totalorder %s33_s19, %s33_s19 }
   0x4   :  { %p3135_p0 = scmp.ne.s32.totalorder %s33_s19, %s3134_s20  ;;  %p3140_p2 = scmp.lt.s32.totalorder %s3134_s20, %s3134_s20 }
   0x6   :  { %p3141_p3 = por %p3140_p2, %p3139_p1 }
   0x8   :  { %p3142_p4 = pnand %p3141_p3, %p3135_p0 }
   0xa   :  { %3145 = shalt.err (!%p3142_p4)
}
   0xb   :  { %s3171_s21 = smov 128   ;;  %s3172_s22 = smov 8  }
   0xc   :  { %38 = dma.hbm_to_vmem [thread:$0]  %s3493_s2, 12544, %s33_s19, [#allocation3], %s3171_s21, %s3171_s21, %s3172_s22  }
   0xd   :  { %s3173_s25 = smov [#allocation4]  }
   0xe   :  { %s62_s26 = sshll.u32 %s3173_s25, 4  ;;  %s63_s26 = int_to_ptr.vmem [resolvable:$true] %s62_s26 }
   0xf   :  { %s3154_s27 = scalar_lea.vmem %s63_s26, 14336  ;;  %p3159_p6 = scmp.lt.s32.totalorder %s63_s26, %s63_s26 }
  0x10   :  { %p3155_p5 = scmp.ne.s32.totalorder %s63_s26, %s3154_s27  ;;  %p3160_p7 = scmp.lt.s32.totalorder %s3154_s27, %s3154_s27 }
  0x12   :  { %p3161_p8 = por %p3160_p7, %p3159_p6 }
  0x14   :  { %p3162_p9 = pnand %p3161_p8, %p3155_p5 }
  0x16   :  { %3165 = shalt.err (!%p3162_p9)
}
  0x17   :  { %s3174_s28 = smov 448   ;;  %s3175_s29 = smov 28  }
  0x18   :  { %68 = dma.hbm_to_vmem [thread:$0]  %s3503_s12, 14336, %s63_s26, [#allocation5], %s3174_s28, %s3174_s28, %s3175_s29  }
  0x19   :  { %3166 = dma.done.wait [#allocation3], 12544  }
  0x1a   :  { %3167 = vsyncadd [#allocation3], 4294954752 }
  0x1b   :  { %3168 = dma.done.wait [#allocation5], 14336  }
  0x1c   :  { %3169 = vsyncadd [#allocation5], 4294952960  ;;  %v3176_v0 = vmov 0   ;;  %v2717_v1 = vld [vmem:[#allocation2 + $0x74] ss:$8 sps:$4 sm:$0xff]   ;;  %vm721_vm0 = vcmask 130048  }
  0x1d   :  { %2713 = vset.pattern.permute.xlu0 %v3176_v0  ;;  %2714 = vset.pattern.permute.xlu1 %v3176_v0  ;;  %v2719_v2 = vld [vmem:[#allocation2 + $0x70] ss:$8 sps:$4 sm:$0xff]   ;;  %v2720_v3 = vld [vmem:[#allocation2 + $0x174] ss:$8 sps:$4 sm:$0xff]   ;;  %v2723_v5 = vld [vmem:[#allocation2 + $0x64] ss:$8 sps:$4 sm:$0xff]  }
  0x1e   :  { %725 = vmatprep.subr.bf16.mxu0 %v2717_v1  ;;  %v2722_v4 = vld [vmem:[#allocation2 + $0x170] ss:$8 sps:$4 sm:$0xff]   ;;  %v2725_v6 = vld [vmem:[#allocation2 + $0x60] ss:$8 sps:$4 sm:$0xff]   ;;  %768 = vmatprep.subr.bf16.mxu1 %v2720_v3  ;;  %v2726_v7 = vld [vmem:[#allocation2 + $0x164] ss:$8 sps:$4 sm:$0xff]  }
  0x1f   :  { %726 = vmatpush1.bf16.msra.mxu0 %v2719_v2  ;;  %769 = vmatpush1.bf16.msra.mxu1 %v2722_v4  ;;  %v2728_v8 = vld [vmem:[#allocation2 + $0x160] ss:$8 sps:$4 sm:$0xff]   ;;  %v2729_v9 = vld [vmem:[#allocation2 + $0x54] ss:$8 sps:$4 sm:$0xff]   ;;  %v2731_v10 = vld [vmem:[#allocation2 + $0x50] ss:$8 sps:$4 sm:$0xff]  }
  0x20   :  { %727 = vmatprep.subr.bf16.mxu0 %v2723_v5  ;;  %770 = vmatprep.subr.bf16.mxu1 %v2726_v7  ;;  %v2732_v11 = vld [vmem:[#allocation2 + $0x154] ss:$8 sps:$4 sm:$0xff]   ;;  %v2735_v12 = vld [vmem:[#allocation2 + $0x44] ss:$8 sps:$4 sm:$0xff]   ;;  %v2734_v13 = vld [vmem:[#allocation2 + $0x150] ss:$8 sps:$4 sm:$0xff]  }
  0x21   :  { %v2738_v14 = vld [vmem:[#allocation2 + $0x144] ss:$8 sps:$4 sm:$0xff]   ;;  %v2737_v15 = vld [vmem:[#allocation2 + $0x40] ss:$8 sps:$4 sm:$0xff]   ;;  %v2741_v16 = vld [vmem:[#allocation2 + $0x34] ss:$8 sps:$4 sm:$0xff]  }
  0x22   :  { %v2740_v17 = vld [vmem:[#allocation2 + $0x140] ss:$8 sps:$4 sm:$0xff]   ;;  %v2744_v18 = vld [vmem:[#allocation2 + $0x134] ss:$8 sps:$4 sm:$0xff]   ;;  %v2743_v19 = vld [vmem:[#allocation2 + $0x30] ss:$8 sps:$4 sm:$0xff]  }
  0x23   :  { %728 = vmatpush1.bf16.msra.mxu0 %v2725_v6  ;;  %771 = vmatpush1.bf16.msra.mxu1 %v2728_v8  ;;  %v2747_v20 = vld [vmem:[#allocation2 + $0x24] ss:$8 sps:$4 sm:$0xff]   ;;  %v2746_v21 = vld [vmem:[#allocation2 + $0x130] ss:$8 sps:$4 sm:$0xff]   ;;  %v2749_v23 = vld [vmem:[#allocation2 + $0x20] ss:$8 sps:$4 sm:$0xff]  }
  0x24   :  { %729 = vmatprep.subr.bf16.mxu0 %v2729_v9  ;;  %772 = vmatprep.subr.bf16.mxu1 %v2732_v11  ;;  %v2750_v22 = vld [vmem:[#allocation2 + $0x124] ss:$8 sps:$4 sm:$0xff]   ;;  %v2753_v24 = vld [vmem:[#allocation2 + $0x14] ss:$8 sps:$4 sm:$0xff]   ;;  %v2752_v25 = vld [vmem:[#allocation2 + $0x120] ss:$8 sps:$4 sm:$0xff]  }
  0x25   :  { %v2756_v26 = vld [vmem:[#allocation2 + $0x114] ss:$8 sps:$4 sm:$0xff]   ;;  %v2755_v27 = vld [vmem:[#allocation2 + $0x10] ss:$8 sps:$4 sm:$0xff]   ;;  %v2759_v28 = vld [vmem:[#allocation2 + $0x4] ss:$8 sps:$4 sm:$0xff]  }
  0x26   :  { %v2758_v29 = vld [vmem:[#allocation2 + $0x110] ss:$8 sps:$4 sm:$0xff]   ;;  %v2762_v30 = vld [vmem:[#allocation2 + $0x104] ss:$8 sps:$4 sm:$0xff]   ;;  %v2761_v31 = vld [vmem:[#allocation2] ss:$8 sps:$4 sm:$0xff]  }
  0x27   :  { %730 = vmatpush1.bf16.msra.mxu0 %v2731_v10  ;;  %773 = vmatpush1.bf16.msra.mxu1 %v2734_v13  ;;  %v2765_v32 = vld [vmem:[#allocation2 + $0xf4] ss:$8 sps:$4 sm:$0xff]   ;;  %v2764_v33 = vld [vmem:[#allocation2 + $0x100] ss:$8 sps:$4 sm:$0xff]   ;;  %v2767_v35 = vld [vmem:[#allocation2 + $0xf0] ss:$8 sps:$4 sm:$0xff]  }
  0x28   :  { %731 = vmatprep.subr.bf16.mxu0 %v2735_v12  ;;  %774 = vmatprep.subr.bf16.mxu1 %v2738_v14  ;;  %v2768_v34 = vld [vmem:[#allocation2 + $0x1f4] ss:$8 sps:$4 sm:$0xff]   ;;  %v2771_v36 = vld [vmem:[#allocation2 + $0xe4] ss:$8 sps:$4 sm:$0xff]   ;;  %v2770_v37 = vld [vmem:[#allocation2 + $0x1f0] ss:$8 sps:$4 sm:$0xff]  }
  0x29   :  { %v2774_v38 = vld [vmem:[#allocation2 + $0x1e4] ss:$8 sps:$4 sm:$0xff]   ;;  %v2773_v39 = vld [vmem:[#allocation2 + $0xe0] ss:$8 sps:$4 sm:$0xff]   ;;  %v2777_v40 = vld [vmem:[#allocation2 + $0xd4] ss:$8 sps:$4 sm:$0xff]  }
  0x2a   :  { %v2776_v41 = vld [vmem:[#allocation2 + $0x1e0] ss:$8 sps:$4 sm:$0xff]   ;;  %v2780_v42 = vld [vmem:[#allocation2 + $0x1d4] ss:$8 sps:$4 sm:$0xff]   ;;  %v2779_v43 = vld [vmem:[#allocation2 + $0xd0] ss:$8 sps:$4 sm:$0xff]  }
  0x2b   :  { %732 = vmatpush1.bf16.msra.mxu0 %v2737_v15  ;;  %775 = vmatpush1.bf16.msra.mxu1 %v2740_v17  ;;  %v2783_v44 = vld [vmem:[#allocation2 + $0xc4] ss:$8 sps:$4 sm:$0xff]   ;;  %v2782_v45 = vld [vmem:[#allocation2 + $0x1d0] ss:$8 sps:$4 sm:$0xff]   ;;  %v2785_v47 = vld [vmem:[#allocation2 + $0xc0] ss:$8 sps:$4 sm:$0xff]  }
  0x2c   :  { %733 = vmatprep.subr.bf16.mxu0 %v2741_v16  ;;  %776 = vmatprep.subr.bf16.mxu1 %v2744_v18  ;;  %v2786_v46 = vld [vmem:[#allocation2 + $0x1c4] ss:$8 sps:$4 sm:$0xff]   ;;  %v2789_v49 = vld [vmem:[#allocation2 + $0xb4] ss:$8 sps:$4 sm:$0xff]   ;;  %v2788_v50 = vld [vmem:[#allocation2 + $0x1c0] ss:$8 sps:$4 sm:$0xff]  }
  0x2d   :  { %v2814_v48 = vld [vmem:[%s3491_s0 + $0x4] ss:$28 sps:$4 sm:$0xff]   ;;  %v2792_v51 = vld [vmem:[#allocation2 + $0x1b4] ss:$8 sps:$4 sm:$0xff]   ;;  %v2821_v52 = vld [vmem:[%s3491_s0 + $0xc] ss:$28 sps:$4 sm:$0xff]  }
  0x2e   :  { %757 = vmatprep.mubr.bf16.mxu0 %v2814_v48  ;;  %v2791_v53 = vld [vmem:[#allocation2 + $0xb0] ss:$8 sps:$4 sm:$0xff]   ;;  %v2795_v54 = vld [vmem:[#allocation2 + $0xa4] ss:$8 sps:$4 sm:$0xff]   ;;  %800 = vmatprep.mubr.bf16.mxu1 %v2821_v52  ;;  %v2797_v57 = vld [vmem:[#allocation2 + $0xa0] ss:$8 sps:$4 sm:$0xff]  }
  0x2f   :  { %734 = vmatpush1.bf16.msra.mxu0 %v2743_v19  ;;  %777 = vmatpush1.bf16.msra.mxu1 %v2746_v21  ;;  %v2794_v55 = vld [vmem:[#allocation2 + $0x1b0] ss:$8 sps:$4 sm:$0xff]   ;;  %v2798_v56 = vld [vmem:[#allocation2 + $0x1a4] ss:$8 sps:$4 sm:$0xff]   ;;  %v2801_v58 = vld [vmem:[#allocation2 + $0x94] ss:$8 sps:$4 sm:$0xff]  }
  0x30   :  { %735 = vmatprep.subr.bf16.mxu0 %v2747_v20  ;;  %778 = vmatprep.subr.bf16.mxu1 %v2750_v22  ;;  %v2800_v59 = vld [vmem:[#allocation2 + $0x1a0] ss:$8 sps:$4 sm:$0xff]   ;;  %v2804_v60 = vld [vmem:[#allocation2 + $0x194] ss:$8 sps:$4 sm:$0xff]   ;;  %v2803_v61 = vld [vmem:[#allocation2 + $0x90] ss:$8 sps:$4 sm:$0xff]  }
  0x31   :  { %v2807_v62 = vld [vmem:[#allocation2 + $0x84] ss:$8 sps:$4 sm:$0xff]   ;;  %v2806_v63 = vld [vmem:[#allocation2 + $0x190] ss:$8 sps:$4 sm:$0xff]   ;;  %v2809_v2 = vld [vmem:[#allocation2 + $0x80] ss:$8 sps:$4 sm:$0xff]  }
  0x32   :  { %v2810_v1 = vld [vmem:[#allocation2 + $0x184] ss:$8 sps:$4 sm:$0xff]   ;;  %v2818_v3 = vld [vmem:[#allocation2 + $0x274] ss:$8 sps:$4 sm:$0xff]   ;;  %v2815_v4 = vld [vmem:[#allocation2 + $0x180] ss:$8 sps:$4 sm:$0xff]  }
  0x33   :  { %736 = vmatpush1.bf16.msra.mxu0 %v2749_v23  ;;  %779 = vmatpush1.bf16.msra.mxu1 %v2752_v25  ;;  %v2812_v5 = vld [vmem:[%s3491_s0] ss:$28 sps:$4 sm:$0xff]   ;;  %v2816_v6 = vld [vmem:[#allocation2 + $0x270] ss:$8 sps:$4 sm:$0xff]   ;;  %v2819_v7 = vld [vmem:[%s3491_s0 + $0x8] ss:$28 sps:$4 sm:$0xff]  }
  0x34   :  { %737 = vmatprep.subr.bf16.mxu0 %v2753_v24  ;;  %780 = vmatprep.subr.bf16.mxu1 %v2756_v26  ;;  %v2824_v8 = vld [vmem:[#allocation2 + $0x264] ss:$8 sps:$4 sm:$0xff]   ;;  %v2864_v9 = vld [vmem:[#allocation2 + $0x300] ss:$8 sps:$4 sm:$0xff]   ;;  %v2827_v12 = vld [vmem:[#allocation2 + $0x254] ss:$8 sps:$4 sm:$0xff]  }
  0x35   :  { %v2866_v10 = vld [vmem:[#allocation2 + $0x304] ss:$8 sps:$4 sm:$0xff]   ;;  %v2822_v11 = vld [vmem:[#allocation2 + $0x260] ss:$8 sps:$4 sm:$0xff]   ;;  %v2825_v13 = vld [vmem:[#allocation2 + $0x250] ss:$8 sps:$4 sm:$0xff]  }
  0x36   :  { %v2830_v14 = vld [vmem:[#allocation2 + $0x244] ss:$8 sps:$4 sm:$0xff]   ;;  %v2870_v15 = vld [vmem:[%s3491_s0 + $0x18] ss:$28 sps:$4 sm:$0xff]   ;;  %v2828_v17 = vld [vmem:[#allocation2 + $0x240] ss:$8 sps:$4 sm:$0xff]  }
  0x37   :  { %738 = vmatpush1.bf16.msra.mxu0 %v2755_v27  ;;  %781 = vmatpush1.bf16.msra.mxu1 %v2758_v29  ;;  %v2873_v16 = vld [vmem:[%s3491_s0 + $0x14] ss:$28 sps:$4 sm:$0xff]   ;;  %v2836_v20 = vld [vmem:[#allocation2 + $0x224] ss:$8 sps:$4 sm:$0xff]   ;;  %v2834_v21 = vld [vmem:[#allocation2 + $0x220] ss:$8 sps:$4 sm:$0xff]  }
  0x38   :  { %739 = vmatprep.subr.bf16.mxu0 %v2759_v28  ;;  %782 = vmatprep.subr.bf16.mxu1 %v2762_v30  ;;  %v2833_v18 = vld [vmem:[#allocation2 + $0x234] ss:$8 sps:$4 sm:$0xff]   ;;  %v2831_v19 = vld [vmem:[#allocation2 + $0x230] ss:$8 sps:$4 sm:$0xff]   ;;  %v2842_v24 = vld [vmem:[#allocation2 + $0x204] ss:$8 sps:$4 sm:$0xff]  }
  0x39   :  { %v2839_v22 = vld [vmem:[#allocation2 + $0x214] ss:$8 sps:$4 sm:$0xff]   ;;  %v2837_v23 = vld [vmem:[#allocation2 + $0x210] ss:$8 sps:$4 sm:$0xff]   ;;  %v2840_v25 = vld [vmem:[#allocation2 + $0x200] ss:$8 sps:$4 sm:$0xff]  }
  0x3a   :  { %v2845_v26 = vld [vmem:[#allocation2 + $0x2f4] ss:$8 sps:$4 sm:$0xff]   ;;  %v2843_v27 = vld [vmem:[#allocation2 + $0x2f0] ss:$8 sps:$4 sm:$0xff]   ;;  %v2848_v28 = vld [vmem:[#allocation2 + $0x2e4] ss:$8 sps:$4 sm:$0xff]  }
  0x3b   :  { %740 = vmatpush1.bf16.msra.mxu0 %v2761_v31  ;;  %783 = vmatpush1.bf16.msra.mxu1 %v2764_v33  ;;  %v2846_v29 = vld [vmem:[#allocation2 + $0x2e0] ss:$8 sps:$4 sm:$0xff]   ;;  %v2851_v30 = vld [vmem:[#allocation2 + $0x2d4] ss:$8 sps:$4 sm:$0xff]   ;;  %v2849_v31 = vld [vmem:[#allocation2 + $0x2d0] ss:$8 sps:$4 sm:$0xff]  }
  0x3c   :  { %741 = vmatprep.subr.bf16.mxu0 %v2765_v32  ;;  %784 = vmatprep.subr.bf16.mxu1 %v2768_v34  ;;  %v2854_v32 = vld [vmem:[#allocation2 + $0x2c4] ss:$8 sps:$4 sm:$0xff]   ;;  %v2852_v33 = vld [vmem:[#allocation2 + $0x2c0] ss:$8 sps:$4 sm:$0xff]   ;;  %v2857_v34 = vld [vmem:[#allocation2 + $0x2b4] ss:$8 sps:$4 sm:$0xff]  }
  0x3d   :  { %v2879_v48 = vld [vmem:[%s3495_s4 + $0x28] sm:$0xff]   ;;  %v2883_v52 = vld [vmem:[%s3495_s4 + $0x18] sm:$0xff]   ;;  %vm3178_vm1 = vmmov 0   ;;  %s3179_s18 = smov 2   ;;  %vm1121_vm2 = vcmask 523264  }
  0x3f   :  { %742 = vmatpush2.bf16.msra.mxu0 %v2767_v35  ;;  %785 = vmatpush2.bf16.msra.mxu1 %v2770_v37  ;;  %v2855_v35 = vld [vmem:[#allocation2 + $0x2b0] ss:$8 sps:$4 sm:$0xff]   ;;  %v2858_v37 = vld [vmem:[#allocation2 + $0x2a0] ss:$8 sps:$4 sm:$0xff]  }
  0x40   :  { %743 = vmatprep.subr.bf16.mxu0 %v2771_v36  ;;  %786 = vmatprep.subr.bf16.mxu1 %v2774_v38  ;;  %v2860_v36 = vld [vmem:[#allocation2 + $0x2a4] ss:$8 sps:$4 sm:$0xff]   ;;  %v2863_v38 = vld [vmem:[#allocation2 + $0x294] ss:$8 sps:$4 sm:$0xff]  }
  0x43   :  { %744 = vmatpush2.bf16.msra.mxu0 %v2773_v39  ;;  %787 = vmatpush2.bf16.msra.mxu1 %v2776_v41  ;;  %v2861_v39 = vld [vmem:[#allocation2 + $0x290] ss:$8 sps:$4 sm:$0xff]   ;;  %v2867_v41 = vld [vmem:[#allocation2 + $0x280] ss:$8 sps:$4 sm:$0xff]  }
  0x44   :  { %745 = vmatprep.subr.bf16.mxu0 %v2777_v40  ;;  %788 = vmatprep.subr.bf16.mxu1 %v2780_v42  ;;  %v2869_v40 = vld [vmem:[#allocation2 + $0x284] ss:$8 sps:$4 sm:$0xff]  }
  0x45   :  { %v2871_v42 = vld [vmem:[%s3491_s0 + $0x10] ss:$28 sps:$4 sm:$0xff]  }
  0x47   :  { %746 = vmatpush2.bf16.msra.mxu0 %v2779_v43  ;;  %789 = vmatpush2.bf16.msra.mxu1 %v2782_v45  ;;  %v2874_v43 = vld [vmem:[%s3495_s4 + $0x78] sm:$0xff]   ;;  %v2876_v45 = vld [vmem:[%s3495_s4 + $0x70] sm:$0xff]  }
  0x48   :  { %747 = vmatprep.subr.bf16.mxu0 %v2783_v44  ;;  %790 = vmatprep.subr.bf16.mxu1 %v2786_v46  ;;  %v2875_v44 = vld [vmem:[%s3495_s4 + $0x38] sm:$0xff]   ;;  %v2877_v46 = vld [vmem:[%s3495_s4 + $0x30] sm:$0xff]  }
  0x4b   :  { %748 = vmatpush2.bf16.msra.mxu0 %v2785_v47  ;;  %791 = vmatpush2.bf16.msra.mxu1 %v2788_v50  ;;  %v2878_v47 = vld [vmem:[%s3495_s4 + $0x68] sm:$0xff]   ;;  %v2881_v50 = vld [vmem:[%s3495_s4 + $0x20] sm:$0xff]  }
  0x4c   :  { %749 = vmatprep.subr.bf16.mxu0 %v2789_v49  ;;  %792 = vmatprep.subr.bf16.mxu1 %v2792_v51  ;;  %v2880_v49 = vld [vmem:[%s3495_s4 + $0x60] sm:$0xff]   ;;  %v2882_v51 = vld [vmem:[%s3495_s4 + $0x58] sm:$0xff]  }
  0x4f   :  { %750 = vmatpush2.bf16.msra.mxu0 %v2791_v53  ;;  %793 = vmatpush2.bf16.msra.mxu1 %v2794_v55  ;;  %v2884_v53 = vld [vmem:[%s3495_s4 + $0x50] sm:$0xff]   ;;  %v2886_v55 = vld [vmem:[%s3495_s4 + $0x48] sm:$0xff]  }
  0x50   :  { %751 = vmatprep.subr.bf16.mxu0 %v2795_v54  ;;  %794 = vmatprep.subr.bf16.mxu1 %v2798_v56  ;;  %v2885_v54 = vld [vmem:[%s3495_s4 + $0x10] sm:$0xff]   ;;  %v2887_v56 = vld [vmem:[%s3495_s4 + $0x8] sm:$0xff]  }
  0x53   :  { %752 = vmatpush2.bf16.msra.mxu0 %v2797_v57  ;;  %795 = vmatpush2.bf16.msra.mxu1 %v2800_v59  ;;  %v2888_v57 = vld [vmem:[%s3495_s4 + $0x40] sm:$0xff]   ;;  %v3177_v59 = vmov 0.0  }
  0x54   :  { %753 = vmatprep.subr.bf16.mxu0 %v2801_v58  ;;  %796 = vmatprep.subr.bf16.mxu1 %v2804_v60  ;;  %v2889_v58 = vld [vmem:[%s3495_s4] sm:$0xff]   ;;  %v186_v60 = vlaneseq }
  0x57   :  { %754 = vmatpush2.bf16.msra.mxu0 %v2803_v61  ;;  %797 = vmatpush2.bf16.msra.mxu1 %v2806_v63 }
  0x58   :  { %755 = vmatprep.subr.bf16.mxu0 %v2807_v62  ;;  %798 = vmatprep.subr.bf16.mxu1 %v2810_v1  ;;  %v3340_v62 = vshrl.u32 %v186_v60, 7  ;;  %v2496_v60 = vld [vmem:[%s3498_s7] ss:$0 sm:$0xff]  ;;  %s3180_s7 = smov 126  }
  0x5b   :  { %756 = vmatpush2.bf16.msra.mxu0 %v2809_v2  ;;  %799 = vmatpush2.bf16.msra.mxu1 %v2815_v4  ;;  %v3343_v2 = vsub.s32 1, %v3340_v62  ;;  %v3349_v4 = vsub.s32 0, %v3340_v62 }
  0x5c   :  { %811 = vmatprep.subr.bf16.mxu0 %v2818_v3  ;;  %868 = vmatprep.subr.bf16.mxu1 %v2866_v10  ;;  %v184_v3 = vld [vmem:[%s3494_s3] sm:$0x3] }
  0x5e   :  { %758 = vmatmul.mubr.bf16.vlgmr.msra.gmra.mxu0 %v2812_v5  ;;  %801 = vmatmul.mubr.bf16.vlgmr.msra.gmra.mxu1 %v2819_v7  ;;  %v193_v7 = vrot.slane %v184_v3, %v3343_v2 }
  0x5f   :  { %812 = vmatpush1.bf16.msra.mxu0 %v2816_v6  ;;  %886 = vmatprep.mubr.bf16.mxu1 %v3176_v0 }
  0x60   :  { %813 = vmatprep.subr.bf16.mxu0 %v2824_v8  ;;  %869 = vmatpush1.bf16.msra.mxu1 %v2864_v9  ;;  %v189_v8 = vrot.slane %v184_v3, %v3349_v4 }
  0x61   :  { %843 = vmatprep.mubr.bf16.mxu0 %v2873_v16  ;;  %2640 = vmatprep.subr.bf16.mxu1 %v2874_v43  ;;  %v2891_v43 = vld [vmem:[%s3497_s6 + $0x10] sm:$0xff]  }
  0x63   :  { %814 = vmatpush1.bf16.msra.mxu0 %v2822_v11 }
  0x64   :  { %815 = vmatprep.subr.bf16.mxu0 %v2827_v12 }
  0x66   :  { %2478 = vmatmul.mubr.msk.bf16.vlgmr.msra.gmra.mxu1 %vm721_vm0, %v2870_v15 }
  0x67   :  { %816 = vmatpush1.bf16.msra.mxu0 %v2825_v13  ;;  %2641 = vmatpush3.bf16.msra.mxu1 %v2875_v44  ;;  %v2892_v44 = vld [vmem:[%s3497_s6 + $0x8] sm:$0xff]  }
  0x68   :  { %817 = vmatprep.subr.bf16.mxu0 %v2830_v14  ;;  %2642 = vmatprep.subr.bf16.mxu1 %v2876_v45  ;;  %v2893_v45 = vld [vmem:[%s3497_s6] sm:$0xff]  }
  0x6b   :  { %818 = vmatpush1.bf16.msra.mxu0 %v2828_v17  ;;  %2643 = vmatpush3.bf16.msra.mxu1 %v2877_v46  ;;  %v1166_v46 = vld [vmem:[%s3492_s1] sm:$0xff] }
  0x6c   :  { %819 = vmatprep.subr.bf16.mxu0 %v2833_v18  ;;  %2644 = vmatprep.subr.bf16.mxu1 %v2878_v47  ;;  %v1167_v47 = vld [vmem:[%s3492_s1 + $0x8] sm:$0xff] }
  0x6d   :  { %1176 = vrot.lane.b32.xlu0 %v1166_v46, %s3179_s18  ;;  %v2956_v46 = vld [vmem:[#allocation4 + $0x34c] ss:$28 sps:$4 sm:$0xff]  }
  0x6f   :  { %820 = vmatpush1.bf16.msra.mxu0 %v2831_v19  ;;  %2645 = vmatpush3.bf16.msra.mxu1 %v2879_v48 }
  0x70   :  { %821 = vmatprep.subr.bf16.mxu0 %v2836_v20  ;;  %2646 = vmatprep.subr.bf16.mxu1 %v2880_v49 }
  0x71   :  { %1178 = vrot.lane.b32.xlu0 %v1167_v47, %s3179_s18  ;;  %v2954_v47 = vld [vmem:[#allocation4 + $0x348] ss:$28 sps:$4 sm:$0xff]  }
  0x73   :  { %822 = vmatpush1.bf16.msra.mxu0 %v2834_v21  ;;  %2647 = vmatpush3.bf16.msra.mxu1 %v2881_v50 }
  0x74   :  { %823 = vmatprep.subr.bf16.mxu0 %v2839_v22  ;;  %2648 = vmatprep.subr.bf16.mxu1 %v2882_v51  ;;  %v2479_v51 = vld [vmem:[%s3496_s5] ss:$0 sm:$0xff] }
  0x77   :  { %824 = vmatpush1.bf16.msra.mxu0 %v2837_v23  ;;  %2649 = vmatpush3.bf16.msra.mxu1 %v2883_v52 }
  0x78   :  { %825 = vmatprep.subr.bf16.mxu0 %v2842_v24  ;;  %2650 = vmatprep.subr.bf16.mxu1 %v2884_v53 }
  0x7b   :  { %826 = vmatpush1.bf16.msra.mxu0 %v2840_v25  ;;  %2651 = vmatpush3.bf16.msra.mxu1 %v2885_v54 }
  0x7c   :  { %827 = vmatprep.subr.bf16.mxu0 %v2845_v26  ;;  %2652 = vmatprep.subr.bf16.mxu1 %v2886_v55 }
  0x7f   :  { %828 = vmatpush2.bf16.msra.mxu0 %v2843_v27  ;;  %2653 = vmatpush3.bf16.msra.mxu1 %v2887_v56 }
  0x80   :  { %829 = vmatprep.subr.bf16.mxu0 %v2848_v28  ;;  %2654 = vmatprep.subr.bf16.mxu1 %v2888_v57 }
  0x83   :  { %830 = vmatpush2.bf16.msra.mxu0 %v2846_v29  ;;  %2655 = vmatpush3.bf16.msra.mxu1 %v2889_v58 }
  0x84   :  { %831 = vmatprep.subr.bf16.mxu0 %v2851_v30  ;;  %2689 = vmatprep.subr.bf16.mxu1 %v3177_v59 }
  0x87   :  { %832 = vmatpush2.bf16.msra.mxu0 %v2849_v31 }
  0x88   :  { %833 = vmatprep.subr.bf16.mxu0 %v2854_v32 }
  0x8b   :  { %834 = vmatpush2.bf16.msra.mxu0 %v2852_v33 }
  0x8c   :  { %835 = vmatprep.subr.bf16.mxu0 %v2857_v34 }
  0x8f   :  { %836 = vmatpush2.bf16.msra.mxu0 %v2855_v35 }
  0x90   :  { %837 = vmatprep.subr.bf16.mxu0 %v2860_v36 }
  0x93   :  { %838 = vmatpush2.bf16.msra.mxu0 %v2858_v37 }
  0x94   :  { %839 = vmatprep.subr.bf16.mxu0 %v2863_v38 }
  0x97   :  { %840 = vmatpush2.bf16.msra.mxu0 %v2861_v39 }
  0x98   :  { %841 = vmatprep.subr.bf16.mxu0 %v2869_v40 }
  0x9b   :  { %842 = vmatpush2.bf16.msra.mxu0 %v2867_v41 }
  0x9e   :  { %844 = vmatmul.mubr.bf16.vlgmr.msra.gmra.mxu0 %v2871_v42  ;;  %v2890_v42 = vld [vmem:[%s3497_s6 + $0x18] sm:$0xff]  }
 0x11e   :  { %v802_v61 = vpop.f32.mrf.mxu1  ;;  %v759_v63 = vpop.f32.mrf.mxu0 }
 0x11f   :  { %v760_v13 = vadd.f32 %v759_v63, %v189_v8 }
 0x120   :  { %v804_v1 = vpop.f32.mrf.mxu1  ;;  %v761_v5 = vpop.f32.mrf.mxu0 }
 0x121   :  { %v762_v12 = vadd.f32 %v761_v5, %v193_v7  ;;  %v803_v20 = vadd.f32 %v802_v61, %v760_v13 }
 0x122   :  { %v806_v6 = vpop.f32.mrf.mxu1  ;;  %v763_v9 = vpop.f32.mrf.mxu0 }
 0x123   :  { %v764_v15 = vadd.f32 %v763_v9, %v189_v8  ;;  %v805_v18 = vadd.f32 %v804_v1, %v762_v12 }
 0x124   :  { %v808_v10 = vpop.f32.mrf.mxu1  ;;  %v765_v14 = vpop.f32.mrf.mxu0 }
 0x125   :  { %v766_v19 = vadd.f32 %v765_v14, %v193_v7  ;;  %v807_v22 = vadd.f32 %v806_v6, %v764_v15 }
 0x126   :  { %v888_v11 = vpop.f32.mrf.mxu1 }
 0x127   :  { %v809_v27 = vadd.f32 %v808_v10, %v766_v19  ;;  %v1177_v10 = vpop.permute.xlu0 %1176 }
 0x128   :  { %v890_v16 = vpop.f32.mrf.mxu1 }
 0x12a   :  { %v892_v25 = vpop.f32.mrf.mxu1 }
 0x12b   :  { %v1179_v13 = vpop.permute.xlu0 %1178 }
 0x12c   :  { %v894_v34 = vpop.f32.mrf.mxu1 }
 0x15e   :  { %v845_v17 = vpop.f32.mrf.mxu0 }
 0x15f   :  { %v846_v24 = vadd.f32 %v845_v17, %v803_v20  ;;  %v2896_v17 = vld [vmem:[%s3501_s10 + $0x34] ss:$8 sps:$4 sm:$0xff]  }
 0x160   :  { %v847_v21 = vpop.f32.mrf.mxu0 }
 0x161   :  { %v848_v23 = vadd.f32 %v847_v21, %v805_v18  ;;  %v889_v33 = vadd.f32 %v888_v11, %v846_v24  ;;  %v2899_v21 = vld [vmem:[%s3501_s10 + $0x24] ss:$8 sps:$4 sm:$0xff]   ;;  %v3181_v24 = vmov 1  }
 0x162   :  { %v849_v26 = vpop.f32.mrf.mxu0 }
 0x163   :  { %v850_v28 = vadd.f32 %v849_v26, %v807_v22  ;;  %v891_v30 = vadd.f32 %v890_v16, %v848_v23  ;;  %v897_v39 = vmax.f32 %v889_v33, 0.0  ;;  %v2894_v16 = vld [vmem:[%s3501_s10 + $0x30] ss:$8 sps:$4 sm:$0xff]   ;;  %v2897_v23 = vld [vmem:[%s3501_s10 + $0x20] ss:$8 sps:$4 sm:$0xff]  }
 0x164   :  { %v851_v29 = vpop.f32.mrf.mxu0  ;;  %v2900_v26 = vld [vmem:[%s3501_s10 + $0x10] ss:$8 sps:$4 sm:$0xff]   ;;  %v2912_v33 = vld [vmem:[#allocation4 + $0x150] ss:$28 sps:$4 sm:$0xff]  }
 0x165   :  { %v893_v31 = vadd.f32 %v892_v25, %v850_v28  ;;  %v852_v32 = vadd.f32 %v851_v29, %v809_v27  ;;  %v898_v37 = vmax.f32 %v891_v30, 0.0  ;;  %v2902_v25 = vld [vmem:[%s3501_s10 + $0x14] ss:$8 sps:$4 sm:$0xff]   ;;  %v2905_v27 = vld [vmem:[%s3501_s10 + $0x4] ss:$8 sps:$4 sm:$0xff]  }
 0x166   :  { %v2903_v28 = vld [vmem:[%s3501_s10] ss:$8 sps:$4 sm:$0xff]   ;;  %v2906_v29 = vld [vmem:[#allocation4 + $0x188] ss:$28 sps:$4 sm:$0xff]  }
 0x167   :  { %v895_v35 = vadd.f32 %v894_v34, %v852_v32  ;;  %v899_v36 = vmax.f32 %v893_v31, 0.0  ;;  %v2908_v30 = vld [vmem:[#allocation4 + $0x18c] ss:$28 sps:$4 sm:$0xff]   ;;  %v2911_v31 = vld [vmem:[#allocation4 + $0x194] ss:$28 sps:$4 sm:$0xff]  }
 0x168   :  { %v2914_v32 = vld [vmem:[#allocation4 + $0x154] ss:$28 sps:$4 sm:$0xff]   ;;  %2093 = vmatprep.subr.bf16.mxu0 %v2908_v30  ;;  %v2920_v34 = vld [vmem:[#allocation4 + $0x11c] ss:$28 sps:$4 sm:$0xff]  }
 0x169   :  { %v900_v38 = vmax.f32 %v895_v35, 0.0  ;;  %v901_v41 = vpack.c.bf16 %v899_v36, %v897_v39  ;;  %2094 = vmatpush1.bf16.msra.mxu0 %v2906_v29  ;;  %v2918_v35 = vld [vmem:[#allocation4 + $0x118] ss:$28 sps:$4 sm:$0xff]   ;;  %v2926_v36 = vld [vmem:[#allocation4 + $0xe4] ss:$28 sps:$4 sm:$0xff]  }
 0x16a   :  { %2095 = vmatprep.subr.bf16.mxu0 %v2914_v32  ;;  %v2930_v39 = vld [vmem:[#allocation4 + $0xa8] ss:$28 sps:$4 sm:$0xff]   ;;  %v2957_v29 = vld [vmem:[#allocation4 + $0x350] ss:$28 sps:$4 sm:$0xff]   ;;  %v2965_v30 = vld [vmem:[#allocation4 + $0x31c] ss:$28 sps:$4 sm:$0xff]  }
 0x16b   :  { %v902_v40 = vpack.c.bf16 %v900_v38, %v898_v37  ;;  %v2924_v37 = vld [vmem:[#allocation4 + $0xe0] ss:$28 sps:$4 sm:$0xff]   ;;  %v2932_v38 = vld [vmem:[#allocation4 + $0xac] ss:$28 sps:$4 sm:$0xff]  }
 0x16c   :  { %v2971_v32 = vld [vmem:[#allocation4 + $0x2e4] ss:$28 sps:$4 sm:$0xff]  }
 0x16d   :  { %1070 = vmatprep.mubr.bf16.mxu1 %v902_v40  ;;  %2096 = vmatpush1.bf16.msra.mxu0 %v2912_v33  ;;  %v2938_v40 = vld [vmem:[#allocation4 + $0x74] ss:$28 sps:$4 sm:$0xff]   ;;  %v2969_v33 = vld [vmem:[#allocation4 + $0x2e0] ss:$28 sps:$4 sm:$0xff]  }
 0x16e   :  { %1071 = vmatmul.mubr.bf16.vlgmr.msra.gmra.mxu1 %v901_v41  ;;  %2097 = vmatprep.subr.bf16.mxu0 %v2920_v34  ;;  %v2936_v41 = vld [vmem:[#allocation4 + $0x70] ss:$28 sps:$4 sm:$0xff]  }
 0x16f   :  { %2690 = vmatpush3.bf16.msra.mxu1 %v2890_v42  ;;  %2697 = vmatprep.mubr.msk.bf16.mxu1 %vm3178_vm1, %v3177_v59  ;;  %v2944_v42 = vld [vmem:[#allocation4 + $0x3c] ss:$28 sps:$4 sm:$0xff]   ;;  %v2977_v34 = vld [vmem:[#allocation4 + $0x2ac] ss:$28 sps:$4 sm:$0xff]  }
 0x170   :  { %2691 = vmatprep.subr.bf16.mxu1 %v3177_v59 }
 0x171   :  { %2098 = vmatpush1.bf16.msra.mxu0 %v2918_v35  ;;  %v2975_v35 = vld [vmem:[#allocation4 + $0x2a8] ss:$28 sps:$4 sm:$0xff]  }
 0x172   :  { %2099 = vmatprep.subr.bf16.mxu0 %v2926_v36  ;;  %v2983_v36 = vld [vmem:[#allocation4 + $0x274] ss:$28 sps:$4 sm:$0xff]  }
 0x173   :  { %2692 = vmatpush3.bf16.msra.mxu1 %v2891_v43  ;;  %v2942_v43 = vld [vmem:[#allocation4 + $0x38] ss:$28 sps:$4 sm:$0xff]  }
 0x174   :  { %2693 = vmatprep.subr.bf16.mxu1 %v3177_v59 }
 0x175   :  { %2100 = vmatpush1.bf16.msra.mxu0 %v2924_v37  ;;  %v2981_v37 = vld [vmem:[#allocation4 + $0x270] ss:$28 sps:$4 sm:$0xff]  }
 0x176   :  { %2101 = vmatprep.subr.bf16.mxu0 %v2932_v38  ;;  %v2986_v38 = vld [vmem:[#allocation4 + $0x234] ss:$28 sps:$4 sm:$0xff]  }
 0x177   :  { %2694 = vmatpush3.bf16.msra.mxu1 %v2892_v44  ;;  %v2950_v44 = vld [vmem:[#allocation4 + $0x4] ss:$28 sps:$4 sm:$0xff]  }
 0x178   :  { %2695 = vmatprep.subr.bf16.mxu1 %v3177_v59 }
 0x179   :  { %2102 = vmatpush1.bf16.msra.mxu0 %v2930_v39  ;;  %v2989_v39 = vld [vmem:[#allocation4 + $0x23c] ss:$28 sps:$4 sm:$0xff]  }
 0x17a   :  { %2103 = vmatprep.subr.bf16.mxu0 %v2938_v40  ;;  %v2984_v40 = vld [vmem:[#allocation4 + $0x230] ss:$28 sps:$4 sm:$0xff]  }
 0x17b   :  { %2696 = vmatpush3.bf16.msra.mxu1 %v2893_v45  ;;  %v2948_v45 = vld [vmem:[#allocation4] ss:$28 sps:$4 sm:$0xff]  }
 0x17c   :  { %1311 = vmatprep.subr.bf16.mxu1 %v2896_v17  ;;  %v2921_v17 = vld [vmem:[#allocation4 + $0x120] ss:$28 sps:$4 sm:$0xff]  }
 0x17d   :  { %2104 = vmatpush1.bf16.msra.mxu0 %v2936_v41  ;;  %v2987_v41 = vld [vmem:[#allocation4 + $0x238] ss:$28 sps:$4 sm:$0xff]  }
 0x17e   :  { %2105 = vmatprep.subr.bf16.mxu0 %v2944_v42  ;;  %v2992_v42 = vld [vmem:[#allocation4 + $0x1fc] ss:$28 sps:$4 sm:$0xff]  }
 0x181   :  { %2106 = vmatpush1.bf16.msra.mxu0 %v2942_v43  ;;  %v2995_v43 = vld [vmem:[#allocation4 + $0x204] ss:$28 sps:$4 sm:$0xff]  }
 0x182   :  { %2107 = vmatprep.subr.bf16.mxu0 %v2950_v44  ;;  %v2990_v44 = vld [vmem:[#allocation4 + $0x1f8] ss:$28 sps:$4 sm:$0xff]  }
 0x185   :  { %2108 = vmatpush1.bf16.msra.mxu0 %v2948_v45  ;;  %v2993_v45 = vld [vmem:[#allocation4 + $0x200] ss:$28 sps:$4 sm:$0xff]  }
 0x186   :  { %2109 = vmatprep.subr.bf16.mxu0 %v2956_v46  ;;  %v2998_v46 = vld [vmem:[#allocation4 + $0x1c4] ss:$28 sps:$4 sm:$0xff]  }
 0x189   :  { %2110 = vmatpush2.bf16.msra.mxu0 %v2954_v47  ;;  %v3001_v47 = vld [vmem:[#allocation4 + $0x1cc] ss:$28 sps:$4 sm:$0xff]  }
 0x22e   :  { %v2656_v48 = vpop.f32.mrf.mxu1 }
 0x230   :  { %v2657_v49 = vpop.f32.mrf.mxu1 }
 0x231   :  { %v2658_v50 = vadd.f32 %v2657_v49, %v2656_v48  ;;  %v2962_v48 = vld [vmem:[#allocation4 + $0x314] ss:$28 sps:$4 sm:$0xff]  }
 0x232   :  { %v2659_v52 = vpop.f32.mrf.mxu1  ;;  %v2960_v49 = vld [vmem:[#allocation4 + $0x310] ss:$28 sps:$4 sm:$0xff]   ;;  %2111 = vmatprep.subr.bf16.mxu0 %v2962_v48  ;;  %v2996_v48 = vld [vmem:[#allocation4 + $0x1c0] ss:$28 sps:$4 sm:$0xff]  }
 0x233   :  { %v1073_v54 = vadd.f32 %v2658_v50, %v2479_v51  ;;  %v2968_v50 = vld [vmem:[#allocation4 + $0x2dc] ss:$28 sps:$4 sm:$0xff]   ;;  %2112 = vmatpush2.bf16.msra.mxu0 %v2960_v49  ;;  %v2999_v49 = vld [vmem:[#allocation4 + $0x1c8] ss:$28 sps:$4 sm:$0xff]  }
 0x234   :  { %v2660_v53 = vpop.f32.mrf.mxu1  ;;  %2113 = vmatprep.subr.bf16.mxu0 %v2968_v50  ;;  %v3004_v50 = vld [vmem:[#allocation4 + $0x19c] ss:$28 sps:$4 sm:$0xff]  }
 0x235   :  { %v2661_v55 = vadd.f32 %v2660_v53, %v2659_v52  ;;  %v1079_v57 = vmax.f32 %v1073_v54, 0.0  ;;  %v2974_v52 = vld [vmem:[#allocation4 + $0x2a4] ss:$28 sps:$4 sm:$0xff]   ;;  %v2980_v54 = vld [vmem:[#allocation4 + $0x26c] ss:$28 sps:$4 sm:$0xff]  }
 0x236   :  { %v2972_v53 = vld [vmem:[#allocation4 + $0x2a0] ss:$28 sps:$4 sm:$0xff]  }
 0x237   :  { %v1076_v56 = vadd.f32 %v2661_v55, %v2479_v51  ;;  %v2966_v51 = vld [vmem:[#allocation4 + $0x2d8] ss:$28 sps:$4 sm:$0xff]   ;;  %v2978_v55 = vld [vmem:[#allocation4 + $0x268] ss:$28 sps:$4 sm:$0xff]  }
 0x238   :  { %2114 = vmatpush2.bf16.msra.mxu0 %v2966_v51  ;;  %v3005_v51 = vld [vmem:[#allocation4 + $0x360] ss:$28 sps:$4 sm:$0xff]  }
 0x239   :  { %v1080_v58 = vmax.f32 %v1076_v56, 0.0  ;;  %2115 = vmatprep.subr.bf16.mxu0 %v2974_v52  ;;  %v1248_v52 = vld [vmem:[%s3502_s11] sm:$0x3] }
 0x23b   :  { %v1081_v59 = vpack.c.bf16 %v1080_v58, %v1079_v57  ;;  %v2503_v57 = vld [vmem:[%s3499_s8 + $0x1] ss:$0 sm:$0xff]  ;;  %v2502_v58 = vld [vmem:[%s3499_s8] ss:$0 sm:$0xff] }
 0x23c   :  { %2116 = vmatpush2.bf16.msra.mxu0 %v2972_v53 }
 0x23d   :  { %2698 = vmatmul.mubr.msk.bf16.vlgmr.msra.gmra.mxu1 %vm1121_vm2, %v1081_v59  ;;  %2117 = vmatprep.subr.bf16.mxu0 %v2980_v54  ;;  %v1257_v54 = vrot.slane %v1248_v52, %v3343_v2 }
 0x23e   :  { %1335 = vmatprep.mubr.bf16.mxu1 %v3176_v0  ;;  %1312 = vmatpush1.bf16.msra.mxu1 %v2894_v16  ;;  %v2923_v16 = vld [vmem:[#allocation4 + $0x124] ss:$28 sps:$4 sm:$0xff]  }
 0x23f   :  { %1313 = vmatprep.subr.bf16.mxu1 %v2899_v21  ;;  %v2933_v21 = vld [vmem:[#allocation4 + $0xb0] ss:$28 sps:$4 sm:$0xff]  }
 0x240   :  { %2118 = vmatpush2.bf16.msra.mxu0 %v2978_v55  ;;  %v1253_v55 = vrot.slane %v1248_v52, %v3349_v4  ;;  %v3065_v52 = vld [vmem:[#allocation4 + $0x1d4] ss:$28 sps:$4 sm:$0xff]  }
 0x241   :  { %2119 = vmatprep.subr.bf16.mxu0 %v2986_v38  ;;  %v3044_v38 = vld [vmem:[#allocation4 + $0x35c] ss:$28 sps:$4 sm:$0xff]  }
 0x242   :  { %1314 = vmatpush1.bf16.msra.mxu1 %v2897_v23  ;;  %v2939_v23 = vld [vmem:[#allocation4 + $0x78] ss:$28 sps:$4 sm:$0xff]  }
 0x243   :  { %1315 = vmatprep.subr.bf16.mxu1 %v2902_v25  ;;  %v2945_v25 = vld [vmem:[#allocation4 + $0x40] ss:$28 sps:$4 sm:$0xff]  }
 0x244   :  { %2120 = vmatpush2.bf16.msra.mxu0 %v2984_v40  ;;  %v3047_v40 = vld [vmem:[#allocation4 + $0x324] ss:$28 sps:$4 sm:$0xff]  }
 0x245   :  { %2121 = vmatprep.subr.bf16.mxu0 %v2992_v42  ;;  %v3050_v42 = vld [vmem:[#allocation4 + $0x2ec] ss:$28 sps:$4 sm:$0xff]  }
 0x246   :  { %1316 = vmatpush1.bf16.msra.mxu1 %v2900_v26  ;;  %v2953_v26 = vld [vmem:[#allocation4 + $0xc] ss:$28 sps:$4 sm:$0xff]  }
 0x247   :  { %1317 = vmatprep.subr.bf16.mxu1 %v2905_v27  ;;  %v2951_v27 = vld [vmem:[#allocation4 + $0x8] ss:$28 sps:$4 sm:$0xff]  }
 0x248   :  { %2122 = vmatpush2.bf16.msra.mxu0 %v2990_v44  ;;  %v3053_v44 = vld [vmem:[#allocation4 + $0x2b4] ss:$28 sps:$4 sm:$0xff]  }
 0x249   :  { %2123 = vmatprep.subr.bf16.mxu0 %v2998_v46  ;;  %v3056_v46 = vld [vmem:[#allocation4 + $0x27c] ss:$28 sps:$4 sm:$0xff]  }
 0x24a   :  { %1318 = vmatpush1.bf16.msra.mxu1 %v2903_v28  ;;  %v2959_v28 = vld [vmem:[#allocation4 + $0x354] ss:$28 sps:$4 sm:$0xff]  }
 0x24b   :  { %2136 = vmatprep.subr.bf16.mxu1 %v2911_v31  ;;  %v2963_v31 = vld [vmem:[#allocation4 + $0x318] ss:$28 sps:$4 sm:$0xff]  }
 0x24c   :  { %2124 = vmatpush2.bf16.msra.mxu0 %v2996_v48  ;;  %v3059_v48 = vld [vmem:[#allocation4 + $0x244] ss:$28 sps:$4 sm:$0xff]  }
 0x24d   :  { %2179 = vmatprep.subr.bf16.mxu0 %v3004_v50  ;;  %v3062_v50 = vld [vmem:[#allocation4 + $0x20c] ss:$28 sps:$4 sm:$0xff]  }
 0x2fd   :  { %v1159_v61 = vpop.f32.mrf.mxu1 }
 0x2fe   :  { %v1160_v63 = vadd.f32 %v2496_v60, %v1159_v61 }
 0x2ff   :  { %v2699_v1 = vpop.f32.mrf.mxu1 }
 0x300   :  { %v1168_v3 = vmul.f32 0.5, %v1160_v63  ;;  %2361 = vst [vmem:[%s3506_s15] sm:$0xff] %v1160_v63 }
 0x301   :  { %v1162_v5 = vpop.f32.mrf.mxu1 }
 0x302   :  { %v1170_v6 = vmul.f32 1.442695, %v1168_v3  ;;  %v1163_v7 = vadd.f32 %v2496_v60, %v1162_v5  ;;  %v2504_v3 = vld [vmem:[%s3500_s9] ss:$0 sm:$0xff] }
 0x303   :  { %v2700_v8 = vpop.f32.mrf.mxu1 }
 0x304   :  { %3066 = vpow2.f32 %v1170_v6  ;;  %v1169_v9 = vmul.f32 0.5, %v1163_v7  ;;  %2362 = vst [vmem:[%s3506_s15 + $0x8] sm:$0xff] %v1163_v7 }
 0x306   :  { %v1172_v0 = vmul.f32 1.442695, %v1169_v9 }
 0x308   :  { %3068 = vpow2.f32 %v1172_v0 }
 0x311   :  { %v3067_v11 = vpop.eup %3066 }
 0x312   :  { %v1182_v12 = vmul.f32 %v3067_v11, %v1177_v10 }
 0x314   :  { %1186 = vrot.lane.b32.xlu1 %v1182_v12, %s3180_s7  ;;  %v2909_v12 = vld [vmem:[#allocation4 + $0x190] ss:$28 sps:$4 sm:$0xff]  }
 0x315   :  { %v3069_v14 = vpop.eup %3068 }
 0x316   :  { %v1183_v15 = vmul.f32 %v3069_v14, %v1179_v13  ;;  %v2917_v14 = vld [vmem:[#allocation4 + $0x15c] ss:$28 sps:$4 sm:$0xff]  }
 0x318   :  { %1188 = vrot.lane.b32.xlu1 %v1183_v15, %s3180_s7  ;;  %v2915_v15 = vld [vmem:[#allocation4 + $0x158] ss:$28 sps:$4 sm:$0xff]  }
 0x386   :  { %v1187_v18 = vpop.permute.xlu1 %1186 }
 0x387   :  { %v1192_v19 = vadd.f32 %v1187_v18, %v1160_v63  ;;  %v2929_v18 = vld [vmem:[#allocation4 + $0xec] ss:$28 sps:$4 sm:$0xff]  }
 0x389   :  { %1197 = vperm.xlu0 %2713, %v1192_v19  }
 0x38a   :  { %v1189_v20 = vpop.permute.xlu1 %1188 }
 0x38b   :  { %v1193_v22 = vadd.f32 %v1189_v20, %v1163_v7  ;;  %v2935_v20 = vld [vmem:[#allocation4 + $0xb4] ss:$28 sps:$4 sm:$0xff]  }
 0x38d   :  { %2716 = vset.pattern.permute.xlu0 %v3181_v24  ;;  %1202 = vperm.xlu1 %2714, %v1193_v22  }
 0x38e   :  { %1217 = vperm.xlu0 %2716, %v1193_v22   ;;  %v2941_v22 = vld [vmem:[#allocation4 + $0x7c] ss:$28 sps:$4 sm:$0xff]  }
 0x391   :  { %2715 = vset.pattern.permute.xlu1 %v3181_v24  ;;  %v2947_v24 = vld [vmem:[#allocation4 + $0x44] ss:$28 sps:$4 sm:$0xff]  }
 0x392   :  { %1213 = vperm.xlu1 %2715, %v1192_v19   ;;  %v2927_v19 = vld [vmem:[#allocation4 + $0xe8] ss:$28 sps:$4 sm:$0xff]  }
 0x404   :  { %v1198_v56 = vpop.permute.xlu0 %1197 }
 0x405   :  { %v1209_v6 = vmul.f32 %v2502_v58, %v1198_v56 }
 0x408   :  { %v1203_v59 = vpop.permute.xlu1 %1202 }
 0x409   :  { %v1210_v60 = vmul.f32 %v2502_v58, %v1203_v59  ;;  %v1218_v61 = vpop.permute.xlu0 %1217 }
 0x40a   :  { %v1225_v63 = vmul.f32 %v2503_v57, %v1218_v61 }
 0x40c   :  { %v1227_v1 = vadd.f32 %v1225_v63, %v1210_v60 }
 0x40d   :  { %v1214_v5 = vpop.permute.xlu1 %1213 }
 0x40e   :  { %v1224_v7 = vmul.f32 %v2503_v57, %v1214_v5  ;;  %v1236_v8 = vadd.f32 %v2504_v3, %v1227_v1 }
 0x410   :  { %v1226_v9 = vadd.f32 %v1224_v7, %v1209_v6  ;;  %v1238_v10 = vmax.f32 %v1236_v8, 0.0  ;;  %v3002_v8 = vld [vmem:[#allocation4 + $0x198] ss:$28 sps:$4 sm:$0xff]  }
 0x412   :  { %v1235_v0 = vadd.f32 %v2504_v3, %v1226_v9  ;;  %v3006_v9 = vld [vmem:[#allocation4 + $0x1a0] ss:$28 sps:$4 sm:$0xff]  }
 0x414   :  { %v1237_v11 = vmax.f32 %v1235_v0, 0.0 }
 0x416   :  { %v1239_v13 = vpack.c.bf16 %v1238_v10, %v1237_v11  ;;  %v3009_v10 = vld [vmem:[#allocation4 + $0x164] ss:$28 sps:$4 sm:$0xff]  }
 0x417   :  { %v3010_v11 = vld [vmem:[#allocation4 + $0x328] ss:$28 sps:$4 sm:$0xff]  }
 0x418   :  { %2513 = vmatmul.mubr.msk.bf16.vlgmr.msra.gmra.mxu1 %vm1121_vm2, %v1239_v13  ;;  %v3011_v13 = vld [vmem:[#allocation4 + $0x168] ss:$28 sps:$4 sm:$0xff]  }
 0x419   :  { %2137 = vmatpush1.bf16.msra.mxu1 %v2909_v12  ;;  %v3007_v12 = vld [vmem:[#allocation4 + $0x160] ss:$28 sps:$4 sm:$0xff]  }
 0x41a   :  { %2138 = vmatprep.subr.bf16.mxu1 %v2917_v14  ;;  %v3014_v14 = vld [vmem:[#allocation4 + $0x12c] ss:$28 sps:$4 sm:$0xff]  }
 0x41d   :  { %2139 = vmatpush1.bf16.msra.mxu1 %v2915_v15  ;;  %v3015_v15 = vld [vmem:[#allocation4 + $0x2f0] ss:$28 sps:$4 sm:$0xff]  }
 0x41e   :  { %2140 = vmatprep.subr.bf16.mxu1 %v2923_v16  ;;  %v3012_v16 = vld [vmem:[#allocation4 + $0x128] ss:$28 sps:$4 sm:$0xff]  }
 0x421   :  { %2141 = vmatpush1.bf16.msra.mxu1 %v2921_v17  ;;  %v3016_v17 = vld [vmem:[#allocation4 + $0x130] ss:$28 sps:$4 sm:$0xff]  }
 0x422   :  { %2142 = vmatprep.subr.bf16.mxu1 %v2929_v18  ;;  %v3019_v18 = vld [vmem:[#allocation4 + $0xf4] ss:$28 sps:$4 sm:$0xff]  }
 0x425   :  { %2143 = vmatpush1.bf16.msra.mxu1 %v2927_v19  ;;  %v3020_v19 = vld [vmem:[#allocation4 + $0x2b8] ss:$28 sps:$4 sm:$0xff]  }
 0x426   :  { %2144 = vmatprep.subr.bf16.mxu1 %v2935_v20  ;;  %v3017_v20 = vld [vmem:[#allocation4 + $0xf0] ss:$28 sps:$4 sm:$0xff]  }
 0x429   :  { %2145 = vmatpush1.bf16.msra.mxu1 %v2933_v21  ;;  %v3021_v21 = vld [vmem:[#allocation4 + $0xf8] ss:$28 sps:$4 sm:$0xff]  }
 0x42a   :  { %2146 = vmatprep.subr.bf16.mxu1 %v2941_v22  ;;  %v3024_v22 = vld [vmem:[#allocation4 + $0xbc] ss:$28 sps:$4 sm:$0xff]  }
 0x42d   :  { %2147 = vmatpush1.bf16.msra.mxu1 %v2939_v23  ;;  %v3025_v23 = vld [vmem:[#allocation4 + $0x280] ss:$28 sps:$4 sm:$0xff]  }
 0x42e   :  { %2148 = vmatprep.subr.bf16.mxu1 %v2947_v24  ;;  %v3022_v24 = vld [vmem:[#allocation4 + $0xb8] ss:$28 sps:$4 sm:$0xff]  }
 0x431   :  { %2149 = vmatpush1.bf16.msra.mxu1 %v2945_v25  ;;  %v3026_v25 = vld [vmem:[#allocation4 + $0xc0] ss:$28 sps:$4 sm:$0xff]  }
 0x432   :  { %2150 = vmatprep.subr.bf16.mxu1 %v2953_v26  ;;  %v3029_v26 = vld [vmem:[#allocation4 + $0x84] ss:$28 sps:$4 sm:$0xff]  }
 0x435   :  { %2151 = vmatpush1.bf16.msra.mxu1 %v2951_v27  ;;  %v3030_v27 = vld [vmem:[#allocation4 + $0x248] ss:$28 sps:$4 sm:$0xff]  }
 0x436   :  { %2152 = vmatprep.subr.bf16.mxu1 %v2959_v28  ;;  %v3027_v28 = vld [vmem:[#allocation4 + $0x80] ss:$28 sps:$4 sm:$0xff]  }
 0x439   :  { %2153 = vmatpush2.bf16.msra.mxu1 %v2957_v29  ;;  %v3031_v29 = vld [vmem:[#allocation4 + $0x88] ss:$28 sps:$4 sm:$0xff]  }
 0x43a   :  { %2154 = vmatprep.subr.bf16.mxu1 %v2965_v30  ;;  %v3034_v30 = vld [vmem:[#allocation4 + $0x4c] ss:$28 sps:$4 sm:$0xff]  }
 0x43d   :  { %2155 = vmatpush2.bf16.msra.mxu1 %v2963_v31  ;;  %v3035_v31 = vld [vmem:[#allocation4 + $0x210] ss:$28 sps:$4 sm:$0xff]  }
 0x43e   :  { %2156 = vmatprep.subr.bf16.mxu1 %v2971_v32  ;;  %v3032_v32 = vld [vmem:[#allocation4 + $0x48] ss:$28 sps:$4 sm:$0xff]  }
 0x441   :  { %2157 = vmatpush2.bf16.msra.mxu1 %v2969_v33  ;;  %v3036_v33 = vld [vmem:[#allocation4 + $0x50] ss:$28 sps:$4 sm:$0xff]  }
 0x442   :  { %2158 = vmatprep.subr.bf16.mxu1 %v2977_v34  ;;  %v3039_v34 = vld [vmem:[#allocation4 + $0x14] ss:$28 sps:$4 sm:$0xff]  }
 0x445   :  { %2159 = vmatpush2.bf16.msra.mxu1 %v2975_v35  ;;  %v3040_v35 = vld [vmem:[#allocation4 + $0x1d8] ss:$28 sps:$4 sm:$0xff]  }
 0x446   :  { %2160 = vmatprep.subr.bf16.mxu1 %v2983_v36  ;;  %v3037_v36 = vld [vmem:[#allocation4 + $0x10] ss:$28 sps:$4 sm:$0xff]  }
 0x449   :  { %2161 = vmatpush2.bf16.msra.mxu1 %v2981_v37  ;;  %v3041_v37 = vld [vmem:[#allocation4 + $0x18] ss:$28 sps:$4 sm:$0xff]  }
 0x44a   :  { %2162 = vmatprep.subr.bf16.mxu1 %v2989_v39  ;;  %v3042_v39 = vld [vmem:[#allocation4 + $0x358] ss:$28 sps:$4 sm:$0xff]  }
 0x44d   :  { %2163 = vmatpush2.bf16.msra.mxu1 %v2987_v41  ;;  %v3045_v41 = vld [vmem:[#allocation4 + $0x320] ss:$28 sps:$4 sm:$0xff]  }
 0x44e   :  { %2164 = vmatprep.subr.bf16.mxu1 %v2995_v43  ;;  %v3048_v43 = vld [vmem:[#allocation4 + $0x2e8] ss:$28 sps:$4 sm:$0xff]  }
 0x451   :  { %2165 = vmatpush2.bf16.msra.mxu1 %v2993_v45  ;;  %v3051_v45 = vld [vmem:[#allocation4 + $0x2b0] ss:$28 sps:$4 sm:$0xff]  }
 0x452   :  { %2166 = vmatprep.subr.bf16.mxu1 %v3001_v47  ;;  %v3054_v47 = vld [vmem:[#allocation4 + $0x278] ss:$28 sps:$4 sm:$0xff]  }
 0x455   :  { %2167 = vmatpush2.bf16.msra.mxu1 %v2999_v49  ;;  %v3057_v49 = vld [vmem:[#allocation4 + $0x240] ss:$28 sps:$4 sm:$0xff]  }
 0x456   :  { %2667 = vmatprep.subr.bf16.mxu1 %v3005_v51  ;;  %v3060_v51 = vld [vmem:[#allocation4 + $0x208] ss:$28 sps:$4 sm:$0xff]  }
 0x4d8   :  { %v1337_v53 = vpop.f32.mrf.mxu1 }
 0x4d9   :  { %v1338_v60 = vadd.f32 %v1337_v53, %v1253_v55  ;;  %v3063_v53 = vld [vmem:[#allocation4 + $0x1d0] ss:$28 sps:$4 sm:$0xff]  }
 0x4da   :  { %v1339_v56 = vpop.f32.mrf.mxu1 }
 0x4db   :  { %v1340_v58 = vadd.f32 %v1339_v56, %v1257_v54  ;;  %v1346_v6 = vmax.f32 %v1338_v60, 0.0  ;;  %v1496_v56 = vsub.s32 3, %v3340_v62 }
 0x4dc   :  { %v1341_v57 = vpop.f32.mrf.mxu1 }
 0x4dd   :  { %v1342_v59 = vadd.f32 %v1341_v57, %v1253_v55  ;;  %v1347_v3 = vmax.f32 %v1340_v58, 0.0  ;;  %v3434_v55 = vld [vmem:[%s3504_s13] sm:$0xff] }
 0x4de   :  { %v1343_v61 = vpop.f32.mrf.mxu1  ;;  %v1485_v57 = vrot.slane %v3434_v55, %v3349_v4  ;;  %v1497_v60 = vrot.slane %v3434_v55, %v1496_v56 }
 0x4df   :  { %v1344_v63 = vadd.f32 %v1343_v61, %v1257_v54  ;;  %v1348_v1 = vmax.f32 %v1342_v59, 0.0  ;;  %v1492_v54 = vsub.s32 2, %v3340_v62  ;;  %v1489_v59 = vrot.slane %v3434_v55, %v3343_v2 }
 0x4e1   :  { %v1349_v5 = vmax.f32 %v1344_v63, 0.0  ;;  %v3424_v0 = vpack.c.bf16 %v1348_v1, %v1346_v6  ;;  %v1493_v58 = vrot.slane %v3434_v55, %v1492_v54 }
 0x4e3   :  { %v1351_v7 = vpack.c.bf16 %v1349_v5, %v1347_v3 }
 0x4e5   :  { %2125 = vmatprep.mubr.bf16.mxu0 %v1351_v7  ;;  %2168 = vmatprep.mubr.bf16.mxu1 %v1351_v7 }
 0x4e6   :  { %2126 = vmatmul.mubr.bf16.vlgmr.msra.gmra.mxu0 %v3424_v0  ;;  %2169 = vmatmul.mubr.bf16.vlgmr.msra.gmra.mxu1 %v3424_v0 }
 0x4e7   :  { %2180 = vmatpush1.bf16.msra.mxu0 %v3002_v8  ;;  %2668 = vmatpush3.bf16.msra.mxu1 %v3006_v9 }
 0x4e8   :  { %2211 = vmatprep.mubr.bf16.mxu0 %v1351_v7  ;;  %2254 = vmatprep.mubr.bf16.mxu1 %v1351_v7 }
 0x4e9   :  { %2181 = vmatprep.subr.bf16.mxu0 %v3009_v10  ;;  %2669 = vmatprep.subr.bf16.mxu1 %v3010_v11 }
 0x4eb   :  { %2182 = vmatpush1.bf16.msra.mxu0 %v3007_v12  ;;  %2670 = vmatpush3.bf16.msra.mxu1 %v3011_v13 }
 0x4ec   :  { %2183 = vmatprep.subr.bf16.mxu0 %v3014_v14  ;;  %2671 = vmatprep.subr.bf16.mxu1 %v3015_v15 }
 0x4ef   :  { %2184 = vmatpush1.bf16.msra.mxu0 %v3012_v16  ;;  %2672 = vmatpush3.bf16.msra.mxu1 %v3016_v17 }
 0x4f0   :  { %2185 = vmatprep.subr.bf16.mxu0 %v3019_v18  ;;  %2673 = vmatprep.subr.bf16.mxu1 %v3020_v19 }
 0x4f3   :  { %2186 = vmatpush1.bf16.msra.mxu0 %v3017_v20  ;;  %2674 = vmatpush3.bf16.msra.mxu1 %v3021_v21 }
 0x4f4   :  { %2187 = vmatprep.subr.bf16.mxu0 %v3024_v22  ;;  %2675 = vmatprep.subr.bf16.mxu1 %v3025_v23 }
 0x4f7   :  { %2188 = vmatpush1.bf16.msra.mxu0 %v3022_v24  ;;  %2676 = vmatpush3.bf16.msra.mxu1 %v3026_v25 }
 0x4f8   :  { %2189 = vmatprep.subr.bf16.mxu0 %v3029_v26  ;;  %2677 = vmatprep.subr.bf16.mxu1 %v3030_v27 }
 0x4fb   :  { %2190 = vmatpush1.bf16.msra.mxu0 %v3027_v28  ;;  %2678 = vmatpush3.bf16.msra.mxu1 %v3031_v29 }
 0x4fc   :  { %2191 = vmatprep.subr.bf16.mxu0 %v3034_v30  ;;  %2679 = vmatprep.subr.bf16.mxu1 %v3035_v31 }
 0x4ff   :  { %2192 = vmatpush1.bf16.msra.mxu0 %v3032_v32  ;;  %2680 = vmatpush3.bf16.msra.mxu1 %v3036_v33 }
 0x500   :  { %2193 = vmatprep.subr.bf16.mxu0 %v3039_v34  ;;  %2681 = vmatprep.subr.bf16.mxu1 %v3040_v35 }
 0x503   :  { %2194 = vmatpush1.bf16.msra.mxu0 %v3037_v36  ;;  %2682 = vmatpush3.bf16.msra.mxu1 %v3041_v37 }
 0x504   :  { %2195 = vmatprep.subr.bf16.mxu0 %v3044_v38  ;;  %v1508_v38 = vsub.s32 6, %v3340_v62 }
 0x506   :  { %2255 = vmatmul.mubr.bf16.vlgmr.msra.gmra.mxu1 %v3424_v0 }
 0x507   :  { %2196 = vmatpush2.bf16.msra.mxu0 %v3042_v39 }
 0x508   :  { %2197 = vmatprep.subr.bf16.mxu0 %v3047_v40  ;;  %v1509_v40 = vrot.slane %v3434_v55, %v1508_v38 }
 0x50b   :  { %2198 = vmatpush2.bf16.msra.mxu0 %v3045_v41 }
 0x50c   :  { %2199 = vmatprep.subr.bf16.mxu0 %v3050_v42 }
 0x50f   :  { %2200 = vmatpush2.bf16.msra.mxu0 %v3048_v43 }
 0x510   :  { %2201 = vmatprep.subr.bf16.mxu0 %v3053_v44 }
 0x513   :  { %2202 = vmatpush2.bf16.msra.mxu0 %v3051_v45 }
 0x514   :  { %2203 = vmatprep.subr.bf16.mxu0 %v3056_v46 }
 0x517   :  { %2204 = vmatpush2.bf16.msra.mxu0 %v3054_v47 }
 0x518   :  { %2205 = vmatprep.subr.bf16.mxu0 %v3059_v48 }
 0x51b   :  { %2206 = vmatpush2.bf16.msra.mxu0 %v3057_v49 }
 0x51c   :  { %2207 = vmatprep.subr.bf16.mxu0 %v3062_v50 }
 0x51f   :  { %2208 = vmatpush2.bf16.msra.mxu0 %v3060_v51 }
 0x520   :  { %2209 = vmatprep.subr.bf16.mxu0 %v3065_v52 }
 0x523   :  { %2210 = vmatpush2.bf16.msra.mxu0 %v3063_v53 }
 0x526   :  { %2212 = vmatmul.mubr.bf16.vlgmr.msra.gmra.mxu0 %v3424_v0 }
 0x5a6   :  { %v2127_v61 = vpop.f32.mrf.mxu0  ;;  %v2170_v63 = vpop.f32.mrf.mxu1 }
 0x5a7   :  { %v2128_v1 = vadd.f32 %v2127_v61, %v1485_v57  ;;  %v2171_v3 = vadd.f32 %v2170_v63, %v1493_v58  ;;  %v1500_v61 = vsub.s32 4, %v3340_v62 }
 0x5a8   :  { %v2129_v5 = vpop.f32.mrf.mxu0  ;;  %v2172_v6 = vpop.f32.mrf.mxu1 }
 0x5a9   :  { %v2626_v7 = vmul.f32 -1.442695, %v2128_v1  ;;  %v2628_v8 = vmul.f32 -1.442695, %v2171_v3  ;;  %v2130_v9 = vadd.f32 %v2129_v5, %v1489_v59  ;;  %v2173_v0 = vadd.f32 %v2172_v6, %v1497_v60 }
 0x5aa   :  { %v2131_v10 = vpop.f32.mrf.mxu0  ;;  %v2174_v11 = vpop.f32.mrf.mxu1  ;;  %v1504_v3 = vsub.s32 5, %v3340_v62  ;;  %v1501_v5 = vrot.slane %v3434_v55, %v1500_v61 }
 0x5ab   :  { %3070 = vpow2.f32 %v2626_v7  ;;  %v2627_v4 = vmul.f32 -1.442695, %v2130_v9  ;;  %v2629_v12 = vmul.f32 -1.442695, %v2173_v0  ;;  %v2132_v13 = vadd.f32 %v2131_v10, %v1485_v57 }
 0x5ac   :  { %3072 = vpow2.f32 %v2628_v8  ;;  %v2175_v2 = vadd.f32 %v2174_v11, %v1493_v58  ;;  %v2133_v14 = vpop.f32.mrf.mxu0  ;;  %v2176_v15 = vpop.f32.mrf.mxu1  ;;  %v1505_v6 = vrot.slane %v3434_v55, %v1504_v3 }
 0x5ad   :  { %3074 = vpow2.f32 %v2627_v4  ;;  %v2633_v16 = vmul.f32 -1.442695, %v2132_v13  ;;  %v2134_v17 = vadd.f32 %v2133_v14, %v1489_v59  ;;  %v2177_v18 = vadd.f32 %v2176_v15, %v1497_v60 }
 0x5ae   :  { %3076 = vpow2.f32 %v2629_v12  ;;  %v2635_v19 = vmul.f32 -1.442695, %v2175_v2 }
 0x5af   :  { %3078 = vpow2.f32 %v2633_v16  ;;  %v2634_v20 = vmul.f32 -1.442695, %v2134_v17  ;;  %v2636_v21 = vmul.f32 -1.442695, %v2177_v18 }
 0x5b0   :  { %3080 = vpow2.f32 %v2635_v19 }
 0x5b1   :  { %3082 = vpow2.f32 %v2634_v20 }
 0x5b2   :  { %3084 = vpow2.f32 %v2636_v21 }
 0x5b8   :  { %v3071_v22 = vpop.eup %3070 }
 0x5b9   :  { %v3073_v23 = vpop.eup %3072  ;;  %v2305_v24 = vadd.f32 1.0, %v3071_v22 }
 0x5ba   :  { %v3075_v25 = vpop.eup %3074  ;;  %v2307_v26 = vadd.f32 1.0, %v3073_v23 }
 0x5bb   :  { %v3077_v27 = vpop.eup %3076  ;;  %3086 = vrcp.f32 %v2305_v24  ;;  %v2306_v28 = vadd.f32 1.0, %v3075_v25 }
 0x5bc   :  { %v3079_v29 = vpop.eup %3078  ;;  %3088 = vrcp.f32 %v2307_v26  ;;  %v2308_v30 = vadd.f32 1.0, %v3077_v27 }
 0x5bd   :  { %v3081_v31 = vpop.eup %3080  ;;  %3090 = vrcp.f32 %v2306_v28  ;;  %v2312_v32 = vadd.f32 1.0, %v3079_v29 }
 0x5be   :  { %v3083_v33 = vpop.eup %3082  ;;  %3092 = vrcp.f32 %v2308_v30  ;;  %v2314_v34 = vadd.f32 1.0, %v3081_v31 }
 0x5bf   :  { %v3085_v35 = vpop.eup %3084  ;;  %3094 = vrcp.f32 %v2312_v32  ;;  %v2313_v36 = vadd.f32 1.0, %v3083_v33 }
 0x5c0   :  { %3096 = vrcp.f32 %v2314_v34  ;;  %v2315_v37 = vadd.f32 1.0, %v3085_v35 }
 0x5c1   :  { %3098 = vrcp.f32 %v2313_v36 }
 0x5c2   :  { %3100 = vrcp.f32 %v2315_v37 }
 0x5c6   :  { %v2683_v39 = vpop.f32.mrf.mxu1 }
 0x5c8   :  { %v3087_v41 = vpop.eup %3086  ;;  %v2684_v42 = vpop.f32.mrf.mxu1 }
 0x5c9   :  { %v3089_v43 = vpop.eup %3088  ;;  %2347 = vst [vmem:[%s3505_s14] sm:$0xff] %v3087_v41  ;;  %v2685_v44 = vadd.f32 %v2684_v42, %v2683_v39 }
 0x5ca   :  { %v3091_v45 = vpop.eup %3090  ;;  %2349 = vst [vmem:[%s3505_s14 + $0x10] sm:$0xff] %v3089_v43  ;;  %v2686_v46 = vpop.f32.mrf.mxu1 }
 0x5cb   :  { %v3093_v47 = vpop.eup %3092  ;;  %2348 = vst [vmem:[%s3505_s14 + $0x8] sm:$0xff] %v3091_v45  ;;  %v2257_v48 = vadd.f32 %v2685_v44, %v1509_v40 }
 0x5cc   :  { %v3095_v49 = vpop.eup %3094  ;;  %2350 = vst [vmem:[%s3505_s14 + $0x18] sm:$0xff] %v3093_v47  ;;  %v2687_v50 = vpop.f32.mrf.mxu1 }
 0x5cd   :  { %v3097_v51 = vpop.eup %3096  ;;  %2354 = vst [vmem:[%s3505_s14 + $0x38] sm:$0xff] %v3095_v49  ;;  %v2632_v52 = vmul.f32 -1.442695, %v2257_v48  ;;  %v2688_v53 = vadd.f32 %v2687_v50, %v2686_v46 }
 0x5ce   :  { %v3099_v54 = vpop.eup %3098  ;;  %2356 = vst [vmem:[%s3505_s14 + $0x48] sm:$0xff] %v3097_v51 }
 0x5cf   :  { %v3101_v56 = vpop.eup %3100  ;;  %2355 = vst [vmem:[%s3505_s14 + $0x40] sm:$0xff] %v3099_v54  ;;  %3102 = vpow2.f32 %v2632_v52  ;;  %v2260_v57 = vadd.f32 %v2688_v53, %v1509_v40 }
 0x5d0   :  { %2357 = vst [vmem:[%s3505_s14 + $0x50] sm:$0xff] %v3101_v56 }
 0x5d1   :  { %v2639_v58 = vmul.f32 -1.442695, %v2260_v57 }
 0x5d3   :  { %3104 = vpow2.f32 %v2639_v58 }
 0x5dc   :  { %v3103_v59 = vpop.eup %3102 }
 0x5dd   :  { %v2311_v60 = vadd.f32 1.0, %v3103_v59 }
 0x5df   :  { %3106 = vrcp.f32 %v2311_v60 }
 0x5e0   :  { %v3105_v63 = vpop.eup %3104 }
 0x5e1   :  { %v2318_v1 = vadd.f32 1.0, %v3105_v63 }
 0x5e3   :  { %3108 = vrcp.f32 %v2318_v1 }
 0x5e6   :  { %v2213_v7 = vpop.f32.mrf.mxu0 }
 0x5e7   :  { %v2214_v8 = vadd.f32 %v2213_v7, %v1501_v5 }
 0x5e8   :  { %v2215_v9 = vpop.f32.mrf.mxu0 }
 0x5e9   :  { %v2630_v0 = vmul.f32 -1.442695, %v2214_v8  ;;  %v2216_v10 = vadd.f32 %v2215_v9, %v1505_v6 }
 0x5ea   :  { %v2217_v11 = vpop.f32.mrf.mxu0 }
 0x5eb   :  { %3110 = vpow2.f32 %v2630_v0  ;;  %v2631_v4 = vmul.f32 -1.442695, %v2216_v10  ;;  %v2218_v12 = vadd.f32 %v2217_v11, %v1501_v5 }
 0x5ec   :  { %v3107_v13 = vpop.eup %3106  ;;  %v2219_v2 = vpop.f32.mrf.mxu0 }
 0x5ed   :  { %2353 = vst [vmem:[%s3505_s14 + $0x30] sm:$0xff] %v3107_v13  ;;  %3112 = vpow2.f32 %v2631_v4  ;;  %v2637_v62 = vmul.f32 -1.442695, %v2218_v12  ;;  %v2220_v14 = vadd.f32 %v2219_v2, %v1505_v6 }
 0x5ef   :  { %3114 = vpow2.f32 %v2637_v62  ;;  %v2638_v55 = vmul.f32 -1.442695, %v2220_v14 }
 0x5f0   :  { %v3109_v15 = vpop.eup %3108 }
 0x5f1   :  { %2360 = vst [vmem:[%s3505_s14 + $0x68] sm:$0xff] %v3109_v15  ;;  %3116 = vpow2.f32 %v2638_v55 }
 0x5f8   :  { %v3111_v16 = vpop.eup %3110 }
 0x5f9   :  { %v2309_v17 = vadd.f32 1.0, %v3111_v16 }
 0x5fa   :  { %v3113_v18 = vpop.eup %3112 }
 0x5fb   :  { %3118 = vrcp.f32 %v2309_v17  ;;  %v2310_v19 = vadd.f32 1.0, %v3113_v18 }
 0x5fc   :  { %v3115_v20 = vpop.eup %3114 }
 0x5fd   :  { %3120 = vrcp.f32 %v2310_v19  ;;  %v2316_v21 = vadd.f32 1.0, %v3115_v20 }
 0x5fe   :  { %v3117_v22 = vpop.eup %3116 }
 0x5ff   :  { %3122 = vrcp.f32 %v2316_v21  ;;  %v2317_v23 = vadd.f32 1.0, %v3117_v22 }
 0x601   :  { %3124 = vrcp.f32 %v2317_v23 }
 0x608   :  { %v3119_v24 = vpop.eup %3118 }
 0x609   :  { %2351 = vst [vmem:[%s3505_s14 + $0x20] sm:$0xff] %v3119_v24 }
 0x60a   :  { %v3121_v25 = vpop.eup %3120 }
 0x60b   :  { %2352 = vst [vmem:[%s3505_s14 + $0x28] sm:$0xff] %v3121_v25 }
 0x60c   :  { %v3123_v26 = vpop.eup %3122 }
 0x60d   :  { %2358 = vst [vmem:[%s3505_s14 + $0x58] sm:$0xff] %v3123_v26 }
 0x60e   :  { %v3125_v27 = vpop.eup %3124 }
 0x60f   :  { %2359 = vst [vmem:[%s3505_s14 + $0x60] sm:$0xff] %v3125_v27 }
 0x610   :  { %2371 = vsyncpa [#allocation3], 1 }
 0x611   :  { %2372 = vsyncpa [#allocation5], 1 }

</bundles_post_ra>
